<compile_context>
chip_gen: v7x
topology: tpu7x:2x2x1
jax: 0.10.0
libtpu: 0.0.40
codegen_flags: <defaults>
</compile_context>

<pallas_src>
import functools

import jax
import jax.numpy as jnp
from jax import lax
from jax.experimental import pallas as pl
from jax.experimental.pallas import tpu as pltpu


def _round_up(n, m):
    return ((n + m - 1) // m) * m


def _lstm_chunk_kernel(x_ref, wih_ref, whh_ref, b_ref, wfc_ref, bfc_ref,
                       out_ref, h_ref, c_ref, xproj_ref,
                       *, chunk_t, bt, hp, seq_len, unroll, w_dtype):
    """One grid step = (one batch block) x (one chunk of `chunk_t` timesteps).

    x_ref    : (chunk_t * bt, Dp)   time-major within the chunk, bf16
    wih_ref  : (Dp, 4*hp)           padded W_ih^T, bf16
    whh_ref  : (hp, 4*hp)           padded W_hh^T, bf16
    b_ref    : (1, 4*hp)            padded (b_ih + b_hh), f32
    wfc_ref  : (hp, Op)             padded fc.weight^T, bf16
    bfc_ref  : (1, Op)              padded fc.bias, f32
    out_ref  : (bt, Op)             fc(h_n) for this batch block (last chunk)
    h_ref    : (bt, hp)  VMEM scratch, carried across time chunks
    c_ref    : (bt, hp)  VMEM scratch, carried across time chunks
    xproj_ref: (chunk_t * bt, 4*hp) VMEM scratch, hoisted input projection
    """
    tc = pl.program_id(1)
    nt = pl.num_programs(1)

    @pl.when(tc == 0)
    def _init():
        h_ref[...] = jnp.zeros_like(h_ref)
        c_ref[...] = jnp.zeros_like(c_ref)

    # Hoisted input projection for the whole chunk: one large MXU matmul with
    # the bias folded in.  Stored in VMEM scratch so per-step reads below are
    # aligned, zero-cost ref views.
    xproj_ref[...] = (
        jnp.dot(x_ref[...], wih_ref[...], preferred_element_type=jnp.float32)
        + b_ref[...])

    whh = whh_ref[...]                       # (hp, 4*hp) resident, bf16
    t_base = tc * chunk_t

    def step(tt, carry):
        h, c = carry                         # (bt, hp) f32
        row0 = pl.multiple_of(tt * bt, 8)    # sublane-aligned dynamic slice
        g = xproj_ref[pl.ds(row0, bt), :] + jnp.dot(
            h.astype(w_dtype), whh, preferred_element_type=jnp.float32)
        i_g = jax.nn.sigmoid(g[:, 0 * hp:1 * hp])
        f_g = jax.nn.sigmoid(g[:, 1 * hp:2 * hp])
        g_g = jnp.tanh(g[:, 2 * hp:3 * hp])
        o_g = jax.nn.sigmoid(g[:, 3 * hp:4 * hp])
        c_new = f_g * c + i_g * g_g
        h_new = o_g * jnp.tanh(c_new)
        # Guard padded tail timesteps (T need not divide chunk_t): padded
        # steps must not touch the carry (bias+sigmoid would corrupt h_n).
        valid = (t_base + tt) < seq_len
        h = jnp.where(valid, h_new, h)
        c = jnp.where(valid, c_new, c)
        return (h, c)

    h, c = lax.fori_loop(0, chunk_t, step, (h_ref[...], c_ref[...]),
                         unroll=unroll)
    h_ref[...] = h
    c_ref[...] = c

    @pl.when(tc == nt - 1)
    def _finalize():
        out_ref[...] = (
            jnp.dot(h.astype(w_dtype), wfc_ref[...],
                    preferred_element_type=jnp.float32)
            + bfc_ref[...]).astype(out_ref.dtype)


def lstm_model_forward(x, params, *, max_chunk_t=128, batch_tile_cap=256,
                       unroll=8, weights_dtype=jnp.bfloat16):
    """Equivalent of LSTMModel.forward(x, batchSize) for layerNum == 1.

    x: (batch, seq, inputDim) (batch_first, like PyTorch)
    returns: (batch, outputDim) float32
    """
    x = x.astype(jnp.float32)
    B, T, D = x.shape
    H = params["w_hh"].shape[1]   # w_hh: (4H, H)
    O = params["w_fc"].shape[0]   # w_fc: (O, H)

    Hp = _round_up(H, 128)        # lane-dense hidden (whole-vreg gate slices)
    Op = _round_up(O, 128)        # lane-dense FC output store
    # Pad D to 128 lanes only when it is large enough to matter.
    Dp = _round_up(D, 128) if D > 128 else D

    # Batch tiling: sublane-dense tile, capped so it can fill MXU rows when the
    # batch is large; padded rows are zero and sliced off at the end.
    bt = min(_round_up(B, 8), batch_tile_cap)
    n_bb = -(-_round_up(B, 8) // bt)          # ceil-div
    Bp_total = n_bb * bt

    # Time chunking: fixed chunk, grid covers cdiv(T, chunk_t); keep the
    # per-chunk xproj scratch (chunk_t*bt, 4*Hp) f32 within a few MiB.
    xproj_budget = 6 * 1024 * 1024
    max_ct_vmem = max(1, xproj_budget // (bt * 4 * Hp * 4))
    chunk_t = max(1, min(T, max_chunk_t, max_ct_vmem))
    n_chunks = -(-T // chunk_t)
    Tp = n_chunks * chunk_t
    unroll = max(1, min(unroll, chunk_t))

    f32 = jnp.float32
    w_ih = params["w_ih"].astype(f32)                       # (4H, D)
    w_hh = params["w_hh"].astype(f32)                       # (4H, H)
    b_sum = (params["b_ih"] + params["b_hh"]).astype(f32)   # (4H,)
    w_fc = params["w_fc"].astype(f32)                       # (O, H)
    b_fc = params["b_fc"].astype(f32)                       # (O,)

    # Zero-pad each gate block of the hidden dim to Hp; padded hidden units
    # get zero weights/bias, stay exactly 0 through the recurrence, and
    # contribute nothing to the FC.
    wih_pad = jnp.pad(w_ih.reshape(4, H, D),
                      ((0, 0), (0, Hp - H), (0, Dp - D))).reshape(4 * Hp, Dp)
    wih_t = wih_pad.T.astype(weights_dtype)                  # (Dp, 4*Hp)

    whh_pad = jnp.pad(w_hh.reshape(4, H, H),
                      ((0, 0), (0, Hp - H), (0, Hp - H))).reshape(4 * Hp, Hp)
    whh_t = whh_pad.T.astype(weights_dtype)                  # (Hp, 4*Hp)

    b_pad = jnp.pad(b_sum.reshape(4, H),
                    ((0, 0), (0, Hp - H))).reshape(1, 4 * Hp)  # f32

    wfc_pad = jnp.pad(w_fc, ((0, Op - O), (0, Hp - H)))       # (Op, Hp)
    wfc_t = wfc_pad.T.astype(weights_dtype)                   # (Hp, Op)
    bfc_pad = jnp.pad(b_fc, (0, Op - O)).reshape(1, Op)       # (1, Op) f32

    # Pad batch/time/feature; reorder so each (batch_block, chunk) block is a
    # contiguous (chunk_t*bt, Dp) slab with rows ordered (time, batch).
    x_p = jnp.pad(x, ((0, Bp_total - B), (0, Tp - T), (0, Dp - D)))
    x_blk = (x_p.reshape(n_bb, bt, Tp, Dp)
             .transpose(0, 2, 1, 3)
             .reshape(n_bb, Tp * bt, Dp)
             .astype(weights_dtype))

    kernel = functools.partial(
        _lstm_chunk_kernel, chunk_t=chunk_t, bt=bt, hp=Hp,
        seq_len=T, unroll=unroll, w_dtype=weights_dtype)

    # Advisory cost estimate (helps XLA schedule around a loop-heavy kernel).
    flops = (2 * Bp_total * Tp * Dp * 4 * Hp        # hoisted input projection
             + 2 * Bp_total * Tp * Hp * 4 * Hp      # recurrent matmuls
             + 2 * Bp_total * Hp * Op)              # final FC
    transcendentals = 5 * Bp_total * Tp * Hp
    bytes_accessed = (x_blk.size * x_blk.dtype.itemsize
                      + wih_t.size * wih_t.dtype.itemsize
                      + whh_t.size * whh_t.dtype.itemsize
                      + wfc_t.size * wfc_t.dtype.itemsize
                      + 4 * (b_pad.size + bfc_pad.size + Bp_total * Op))

    out = pl.pallas_call(
        kernel,
        out_shape=jax.ShapeDtypeStruct((Bp_total, Op), jnp.float32),
        grid_spec=pltpu.PrefetchScalarGridSpec(
            num_scalar_prefetch=0,
            grid=(n_bb, n_chunks),
            in_specs=[
                # x streamed chunk-by-chunk (auto double-buffered DMA);
                # leading batch-block dim is squeezed out.
                pl.BlockSpec((None, chunk_t * bt, Dp),
                             lambda bb, t: (bb, t, 0)),
                # weights / biases: same full block every step -> resident
                pl.BlockSpec((Dp, 4 * Hp), lambda bb, t: (0, 0)),
                pl.BlockSpec((Hp, 4 * Hp), lambda bb, t: (0, 0)),
                pl.BlockSpec((1, 4 * Hp), lambda bb, t: (0, 0)),
                pl.BlockSpec((Hp, Op), lambda bb, t: (0, 0)),
                pl.BlockSpec((1, Op), lambda bb, t: (0, 0)),
            ],
            out_specs=pl.BlockSpec((bt, Op), lambda bb, t: (bb, 0)),
            scratch_shapes=[
                pltpu.VMEM((bt, Hp), jnp.float32),               # h carry
                pltpu.VMEM((bt, Hp), jnp.float32),               # c carry
                pltpu.VMEM((chunk_t * bt, 4 * Hp), jnp.float32),  # xproj
            ],
        ),
        compiler_params=pltpu.CompilerParams(
            dimension_semantics=("parallel", "arbitrary"),
            vmem_limit_bytes=32 * 1024 * 1024),
        cost_estimate=pl.CostEstimate(
            flops=int(flops),
            transcendentals=int(transcendentals),
            bytes_accessed=int(bytes_accessed)),
    )(x_blk, wih_t, whh_t, b_pad, wfc_t, bfc_pad)

    return out[:B, :O]


def init_params(key, input_dim, hidden, output_dim):
    """Deterministic param init matching PyTorch shapes (layerNum == 1)."""
    k = jax.random.split(key, 6)
    bound = 1.0 / jnp.sqrt(hidden)
    u = lambda kk, shape: jax.random.uniform(
        kk, shape, jnp.float32, minval=-bound, maxval=bound)
    return {
        "w_ih": u(k[0], (4 * hidden, input_dim)),   # weight_ih_l0
        "w_hh": u(k[1], (4 * hidden, hidden)),      # weight_hh_l0
        "b_ih": u(k[2], (4 * hidden,)),             # bias_ih_l0
        "b_hh": u(k[3], (4 * hidden,)),             # bias_hh_l0
        "w_fc": u(k[4], (output_dim, hidden)),      # fc.weight
        "b_fc": u(k[5], (output_dim,)),             # fc.bias
    }


def _reference_forward(x, params):
    """Pure-JAX f32 reference of the same forward pass (sanity check)."""
    x = x.astype(jnp.float32)
    B, T, D = x.shape
    H = params["w_hh"].shape[1]
    wih_t = params["w_ih"].T
    whh_t = params["w_hh"].T
    b = params["b_ih"] + params["b_hh"]

    def step(carry, xt):
        h, c = carry
        gates = xt @ wih_t + h @ whh_t + b
        i_g = jax.nn.sigmoid(gates[:, 0 * H:1 * H])
        f_g = jax.nn.sigmoid(gates[:, 1 * H:2 * H])
        g_g = jnp.tanh(gates[:, 2 * H:3 * H])
        o_g = jax.nn.sigmoid(gates[:, 3 * H:4 * H])
        c = f_g * c + i_g * g_g
        h = o_g * jnp.tanh(c)
        return (h, c), None

    h0 = jnp.zeros((B, H), jnp.float32)
    c0 = jnp.zeros((B, H), jnp.float32)
    (h_n, _), _ = lax.scan(step, (h0, c0), jnp.transpose(x, (1, 0, 2)))
    return h_n @ params["w_fc"].T + params["b_fc"]


if __name__ == "__main__":
    # Small shapes consistent with the module's forward:
    # x: (batch, seq, inputDim); LSTMModel(inputDim, hiddenNum, outputDim, 1, 'LSTM')
    batch, seq, input_dim, hidden, output_dim = 4, 8, 16, 32, 8

    key = jax.random.PRNGKey(0)
    k_x, k_p = jax.random.split(key)
    x = jax.random.normal(k_x, (batch, seq, input_dim), dtype=jnp.float32)
    params = init_params(k_p, input_dim, hidden, output_dim)

    out = lstm_model_forward(x, params)
    out = jax.block_until_ready(out)

    ref = _reference_forward(x, params)
    assert out.shape == (batch, output_dim)
    # Kernel matmul operands are bf16 (f32 accumulation), so compare with a
    # bf16-appropriate tolerance against the f32 reference.
    assert jnp.allclose(out, ref, atol=2e-2, rtol=2e-2), "mismatch vs reference"

    print("KERNEL_OK")
</pallas_src>

<mosaic_0001>
module attributes {stable_mosaic.version = 11 : i64} {
  func.func @_lstm_chunk_kernel(%arg0: i32, %arg1: i32, %arg2: memref<1x64x16xbf16, #tpu.memory_space<vmem>>, %arg3: memref<16x512xbf16, #tpu.memory_space<vmem>>, %arg4: memref<128x512xbf16, #tpu.memory_space<vmem>>, %arg5: memref<1x512xf32, #tpu.memory_space<vmem>>, %arg6: memref<128x128xbf16, #tpu.memory_space<vmem>>, %arg7: memref<1x128xf32, #tpu.memory_space<vmem>>, %arg8: memref<8x128xf32, #tpu.memory_space<vmem>>, %arg9: memref<8x128xf32, #tpu.memory_space<vmem>>, %arg10: memref<8x128xf32, #tpu.memory_space<vmem>>, %arg11: memref<64x512xf32, #tpu.memory_space<vmem>>) attributes {dimension_semantics = [#tpu.dimension_semantics<parallel>, #tpu.dimension_semantics<arbitrary>], iteration_bounds = array<i64: 1, 1>, scalar_prefetch = 0 : i64, scratch_operands = 3 : i64, tpu.core_type = #tpu.core_type<tc>, window_params = [{transform_indices = @transform_0, window_bounds = array<i64: 1, 64, 16>}, {pipeline_mode = #tpu.pipeline_mode<synchronous>, transform_indices = @transform_1, window_bounds = array<i64: 16, 512>}, {pipeline_mode = #tpu.pipeline_mode<synchronous>, transform_indices = @transform_2, window_bounds = array<i64: 128, 512>}, {pipeline_mode = #tpu.pipeline_mode<synchronous>, transform_indices = @transform_3, window_bounds = array<i64: 1, 512>}, {pipeline_mode = #tpu.pipeline_mode<synchronous>, transform_indices = @transform_4, window_bounds = array<i64: 128, 128>}, {pipeline_mode = #tpu.pipeline_mode<synchronous>, transform_indices = @transform_5, window_bounds = array<i64: 1, 128>}, {transform_indices = @transform_6, window_bounds = array<i64: 8, 128>}]} {
    %c0_i32 = arith.constant 0 : i32
    %0 = arith.cmpi eq, %arg1, %c0_i32 : i32
    %1 = arith.extui %0 : i1 to i32
    %c0_i32_0 = arith.constant 0 : i32
    %2 = arith.cmpi ne, %1, %c0_i32_0 : i32
    scf.if %2 {
      %cst_79 = arith.constant 0.000000e+00 : f32
      %308 = vector.broadcast %cst_79 : f32 to vector<8x128xf32>
      %c0_80 = arith.constant 0 : index
      %c0_81 = arith.constant 0 : index
      %309 = vector.load %arg9[%c0_80, %c0_81] : memref<8x128xf32, #tpu.memory_space<vmem>>, vector<8x128xf32>
      tpu.vector_store %arg9[%c0_80, %c0_81], %308 {strides = array<i32>} : memref<8x128xf32, #tpu.memory_space<vmem>>, vector<8x128xf32>,
      %cst_82 = arith.constant 0.000000e+00 : f32
      %310 = vector.broadcast %cst_82 : f32 to vector<8x128xf32>
      %c0_83 = arith.constant 0 : index
      %c0_84 = arith.constant 0 : index
      %311 = vector.load %arg10[%c0_83, %c0_84] : memref<8x128xf32, #tpu.memory_space<vmem>>, vector<8x128xf32>
      tpu.vector_store %arg10[%c0_83, %c0_84], %310 {strides = array<i32>} : memref<8x128xf32, #tpu.memory_space<vmem>>, vector<8x128xf32>,
    } else {
    }
    %c0 = arith.constant 0 : index
    %c0_1 = arith.constant 0 : index
    %c0_2 = arith.constant 0 : index
    %3 = vector.load %arg2[%c0, %c0_1, %c0_2] : memref<1x64x16xbf16, #tpu.memory_space<vmem>>, vector<1x64x16xbf16>
    %4 = vector.shape_cast %3 : vector<1x64x16xbf16> to vector<64x16xbf16>
    %c0_3 = arith.constant 0 : index
    %c0_4 = arith.constant 0 : index
    %5 = vector.load %arg3[%c0_3, %c0_4] : memref<16x512xbf16, #tpu.memory_space<vmem>>, vector<16x512xbf16>
    %cst = arith.constant dense<0.000000e+00> : vector<64x512xf32>
    %6 = tpu.matmul %4, %5, %cst {dimension_numbers = #tpu.dot_dimension_numbers<[1], [0], [0], [1], [0, 0, 1, 1], [], []>} : vector<64x16xbf16>, vector<16x512xbf16>, vector<64x512xf32> -> vector<64x512xf32>
    %c0_5 = arith.constant 0 : index
    %c0_6 = arith.constant 0 : index
    %7 = vector.load %arg5[%c0_5, %c0_6] : memref<1x512xf32, #tpu.memory_space<vmem>>, vector<1x512xf32>
    %8 = vector.broadcast %7 : vector<1x512xf32> to vector<64x512xf32>
    %9 = arith.addf %6, %8 : vector<64x512xf32>
    %c0_7 = arith.constant 0 : index
    %c0_8 = arith.constant 0 : index
    %10 = vector.load %arg11[%c0_7, %c0_8] : memref<64x512xf32, #tpu.memory_space<vmem>>, vector<64x512xf32>
    tpu.vector_store %arg11[%c0_7, %c0_8], %9 {strides = array<i32>} : memref<64x512xf32, #tpu.memory_space<vmem>>, vector<64x512xf32>,
    %c0_9 = arith.constant 0 : index
    %c0_10 = arith.constant 0 : index
    %11 = vector.load %arg4[%c0_9, %c0_10] : memref<128x512xbf16, #tpu.memory_space<vmem>>, vector<128x512xbf16>
    %c8_i32 = arith.constant 8 : i32
    %12 = arith.muli %arg1, %c8_i32 : i32
    %c0_11 = arith.constant 0 : index
    %c0_12 = arith.constant 0 : index
    %13 = vector.load %arg9[%c0_11, %c0_12] : memref<8x128xf32, #tpu.memory_space<vmem>>, vector<8x128xf32>
    %c0_13 = arith.constant 0 : index
    %c0_14 = arith.constant 0 : index
    %14 = vector.load %arg10[%c0_13, %c0_14] : memref<8x128xf32, #tpu.memory_space<vmem>>, vector<8x128xf32>
    %c0_i32_15 = arith.constant 0 : i32
    %c8_i32_16 = arith.constant 8 : i32
    %15 = arith.muli %c0_i32_15, %c8_i32_16 : i32
    %16 = tpu.assume_multiple %15, 8 : i32
    %17 = arith.index_cast %16 : i32 to index
    %c0_17 = arith.constant 0 : index
    %18 = vector.load %arg11[%17, %c0_17] : memref<64x512xf32, #tpu.memory_space<vmem>>, vector<8x512xf32>
    %19 = arith.truncf %13 : vector<8x128xf32> to vector<8x128xbf16>
    %cst_18 = arith.constant dense<0.000000e+00> : vector<8x512xf32>
    %20 = tpu.matmul %19, %11, %cst_18 {dimension_numbers = #tpu.dot_dimension_numbers<[1], [0], [0], [1], [0, 0, 1, 1], [], []>} : vector<8x128xbf16>, vector<128x512xbf16>, vector<8x512xf32> -> vector<8x512xf32>
    %21 = arith.addf %18, %20 : vector<8x512xf32>
    %22 = vector.extract_strided_slice %21 {offsets = [0, 0], sizes = [8, 128], strides = [1, 1]} : vector<8x512xf32> to vector<8x128xf32>
    %23 = arith.negf %22 : vector<8x128xf32>
    %24 = math.exp %23 : vector<8x128xf32>
    %cst_19 = arith.constant 1.000000e+00 : f32
    %25 = vector.broadcast %cst_19 : f32 to vector<8x128xf32>
    %26 = arith.addf %25, %24 : vector<8x128xf32>
    %27 = arith.divf %25, %26 : vector<8x128xf32>
    %28 = vector.extract_strided_slice %21 {offsets = [0, 128], sizes = [8, 128], strides = [1, 1]} : vector<8x512xf32> to vector<8x128xf32>
    %29 = arith.negf %28 : vector<8x128xf32>
    %30 = math.exp %29 : vector<8x128xf32>
    %cst_20 = arith.constant 1.000000e+00 : f32
    %31 = vector.broadcast %cst_20 : f32 to vector<8x128xf32>
    %32 = arith.addf %31, %30 : vector<8x128xf32>
    %33 = arith.divf %31, %32 : vector<8x128xf32>
    %34 = vector.extract_strided_slice %21 {offsets = [0, 256], sizes = [8, 128], strides = [1, 1]} : vector<8x512xf32> to vector<8x128xf32>
    %35 = math.tanh %34 : vector<8x128xf32>
    %36 = vector.extract_strided_slice %21 {offsets = [0, 384], sizes = [8, 128], strides = [1, 1]} : vector<8x512xf32> to vector<8x128xf32>
    %37 = arith.negf %36 : vector<8x128xf32>
    %38 = math.exp %37 : vector<8x128xf32>
    %cst_21 = arith.constant 1.000000e+00 : f32
    %39 = vector.broadcast %cst_21 : f32 to vector<8x128xf32>
    %40 = arith.addf %39, %38 : vector<8x128xf32>
    %41 = arith.divf %39, %40 : vector<8x128xf32>
    %42 = arith.mulf %33, %14 : vector<8x128xf32>
    %43 = arith.mulf %27, %35 : vector<8x128xf32>
    %44 = arith.addf %42, %43 : vector<8x128xf32>
    %45 = math.tanh %44 : vector<8x128xf32>
    %46 = arith.mulf %41, %45 : vector<8x128xf32>
    %47 = arith.addi %12, %c0_i32_15 : i32
    %c8_i32_22 = arith.constant 8 : i32
    %48 = arith.cmpi slt, %47, %c8_i32_22 : i32
    %49 = arith.select %48, %46, %13 : vector<8x128xf32>
    %50 = arith.select %48, %44, %14 : vector<8x128xf32>
    %c1_i32 = arith.constant 1 : i32
    %c8_i32_23 = arith.constant 8 : i32
    %51 = arith.muli %c1_i32, %c8_i32_23 : i32
    %52 = tpu.assume_multiple %51, 8 : i32
    %53 = arith.index_cast %52 : i32 to index
    %c0_24 = arith.constant 0 : index
    %54 = vector.load %arg11[%53, %c0_24] : memref<64x512xf32, #tpu.memory_space<vmem>>, vector<8x512xf32>
    %55 = arith.truncf %49 : vector<8x128xf32> to vector<8x128xbf16>
    %cst_25 = arith.constant dense<0.000000e+00> : vector<8x512xf32>
    %56 = tpu.matmul %55, %11, %cst_25 {dimension_numbers = #tpu.dot_dimension_numbers<[1], [0], [0], [1], [0, 0, 1, 1], [], []>} : vector<8x128xbf16>, vector<128x512xbf16>, vector<8x512xf32> -> vector<8x512xf32>
    %57 = arith.addf %54, %56 : vector<8x512xf32>
    %58 = vector.extract_strided_slice %57 {offsets = [0, 0], sizes = [8, 128], strides = [1, 1]} : vector<8x512xf32> to vector<8x128xf32>
    %59 = arith.negf %58 : vector<8x128xf32>
    %60 = math.exp %59 : vector<8x128xf32>
    %cst_26 = arith.constant 1.000000e+00 : f32
    %61 = vector.broadcast %cst_26 : f32 to vector<8x128xf32>
    %62 = arith.addf %61, %60 : vector<8x128xf32>
    %63 = arith.divf %61, %62 : vector<8x128xf32>
    %64 = vector.extract_strided_slice %57 {offsets = [0, 128], sizes = [8, 128], strides = [1, 1]} : vector<8x512xf32> to vector<8x128xf32>
    %65 = arith.negf %64 : vector<8x128xf32>
    %66 = math.exp %65 : vector<8x128xf32>
    %cst_27 = arith.constant 1.000000e+00 : f32
    %67 = vector.broadcast %cst_27 : f32 to vector<8x128xf32>
    %68 = arith.addf %67, %66 : vector<8x128xf32>
    %69 = arith.divf %67, %68 : vector<8x128xf32>
    %70 = vector.extract_strided_slice %57 {offsets = [0, 256], sizes = [8, 128], strides = [1, 1]} : vector<8x512xf32> to vector<8x128xf32>
    %71 = math.tanh %70 : vector<8x128xf32>
    %72 = vector.extract_strided_slice %57 {offsets = [0, 384], sizes = [8, 128], strides = [1, 1]} : vector<8x512xf32> to vector<8x128xf32>
    %73 = arith.negf %72 : vector<8x128xf32>
    %74 = math.exp %73 : vector<8x128xf32>
    %cst_28 = arith.constant 1.000000e+00 : f32
    %75 = vector.broadcast %cst_28 : f32 to vector<8x128xf32>
    %76 = arith.addf %75, %74 : vector<8x128xf32>
    %77 = arith.divf %75, %76 : vector<8x128xf32>
    %78 = arith.mulf %69, %50 : vector<8x128xf32>
    %79 = arith.mulf %63, %71 : vector<8x128xf32>
    %80 = arith.addf %78, %79 : vector<8x128xf32>
    %81 = math.tanh %80 : vector<8x128xf32>
    %82 = arith.mulf %77, %81 : vector<8x128xf32>
    %83 = arith.addi %12, %c1_i32 : i32
    %c8_i32_29 = arith.constant 8 : i32
    %84 = arith.cmpi slt, %83, %c8_i32_29 : i32
    %85 = arith.select %84, %82, %49 : vector<8x128xf32>
    %86 = arith.select %84, %80, %50 : vector<8x128xf32>
    %c2_i32 = arith.constant 2 : i32
    %c8_i32_30 = arith.constant 8 : i32
    %87 = arith.muli %c2_i32, %c8_i32_30 : i32
    %88 = tpu.assume_multiple %87, 8 : i32
    %89 = arith.index_cast %88 : i32 to index
    %c0_31 = arith.constant 0 : index
    %90 = vector.load %arg11[%89, %c0_31] : memref<64x512xf32, #tpu.memory_space<vmem>>, vector<8x512xf32>
    %91 = arith.truncf %85 : vector<8x128xf32> to vector<8x128xbf16>
    %cst_32 = arith.constant dense<0.000000e+00> : vector<8x512xf32>
    %92 = tpu.matmul %91, %11, %cst_32 {dimension_numbers = #tpu.dot_dimension_numbers<[1], [0], [0], [1], [0, 0, 1, 1], [], []>} : vector<8x128xbf16>, vector<128x512xbf16>, vector<8x512xf32> -> vector<8x512xf32>
    %93 = arith.addf %90, %92 : vector<8x512xf32>
    %94 = vector.extract_strided_slice %93 {offsets = [0, 0], sizes = [8, 128], strides = [1, 1]} : vector<8x512xf32> to vector<8x128xf32>
    %95 = arith.negf %94 : vector<8x128xf32>
    %96 = math.exp %95 : vector<8x128xf32>
    %cst_33 = arith.constant 1.000000e+00 : f32
    %97 = vector.broadcast %cst_33 : f32 to vector<8x128xf32>
    %98 = arith.addf %97, %96 : vector<8x128xf32>
    %99 = arith.divf %97, %98 : vector<8x128xf32>
    %100 = vector.extract_strided_slice %93 {offsets = [0, 128], sizes = [8, 128], strides = [1, 1]} : vector<8x512xf32> to vector<8x128xf32>
    %101 = arith.negf %100 : vector<8x128xf32>
    %102 = math.exp %101 : vector<8x128xf32>
    %cst_34 = arith.constant 1.000000e+00 : f32
    %103 = vector.broadcast %cst_34 : f32 to vector<8x128xf32>
    %104 = arith.addf %103, %102 : vector<8x128xf32>
    %105 = arith.divf %103, %104 : vector<8x128xf32>
    %106 = vector.extract_strided_slice %93 {offsets = [0, 256], sizes = [8, 128], strides = [1, 1]} : vector<8x512xf32> to vector<8x128xf32>
    %107 = math.tanh %106 : vector<8x128xf32>
    %108 = vector.extract_strided_slice %93 {offsets = [0, 384], sizes = [8, 128], strides = [1, 1]} : vector<8x512xf32> to vector<8x128xf32>
    %109 = arith.negf %108 : vector<8x128xf32>
    %110 = math.exp %109 : vector<8x128xf32>
    %cst_35 = arith.constant 1.000000e+00 : f32
    %111 = vector.broadcast %cst_35 : f32 to vector<8x128xf32>
    %112 = arith.addf %111, %110 : vector<8x128xf32>
    %113 = arith.divf %111, %112 : vector<8x128xf32>
    %114 = arith.mulf %105, %86 : vector<8x128xf32>
    %115 = arith.mulf %99, %107 : vector<8x128xf32>
    %116 = arith.addf %114, %115 : vector<8x128xf32>
    %117 = math.tanh %116 : vector<8x128xf32>
    %118 = arith.mulf %113, %117 : vector<8x128xf32>
    %119 = arith.addi %12, %c2_i32 : i32
    %c8_i32_36 = arith.constant 8 : i32
    %120 = arith.cmpi slt, %119, %c8_i32_36 : i32
    %121 = arith.select %120, %118, %85 : vector<8x128xf32>
    %122 = arith.select %120, %116, %86 : vector<8x128xf32>
    %c3_i32 = arith.constant 3 : i32
    %c8_i32_37 = arith.constant 8 : i32
    %123 = arith.muli %c3_i32, %c8_i32_37 : i32
    %124 = tpu.assume_multiple %123, 8 : i32
    %125 = arith.index_cast %124 : i32 to index
    %c0_38 = arith.constant 0 : index
    %126 = vector.load %arg11[%125, %c0_38] : memref<64x512xf32, #tpu.memory_space<vmem>>, vector<8x512xf32>
    %127 = arith.truncf %121 : vector<8x128xf32> to vector<8x128xbf16>
    %cst_39 = arith.constant dense<0.000000e+00> : vector<8x512xf32>
    %128 = tpu.matmul %127, %11, %cst_39 {dimension_numbers = #tpu.dot_dimension_numbers<[1], [0], [0], [1], [0, 0, 1, 1], [], []>} : vector<8x128xbf16>, vector<128x512xbf16>, vector<8x512xf32> -> vector<8x512xf32>
    %129 = arith.addf %126, %128 : vector<8x512xf32>
    %130 = vector.extract_strided_slice %129 {offsets = [0, 0], sizes = [8, 128], strides = [1, 1]} : vector<8x512xf32> to vector<8x128xf32>
    %131 = arith.negf %130 : vector<8x128xf32>
    %132 = math.exp %131 : vector<8x128xf32>
    %cst_40 = arith.constant 1.000000e+00 : f32
    %133 = vector.broadcast %cst_40 : f32 to vector<8x128xf32>
    %134 = arith.addf %133, %132 : vector<8x128xf32>
    %135 = arith.divf %133, %134 : vector<8x128xf32>
    %136 = vector.extract_strided_slice %129 {offsets = [0, 128], sizes = [8, 128], strides = [1, 1]} : vector<8x512xf32> to vector<8x128xf32>
    %137 = arith.negf %136 : vector<8x128xf32>
    %138 = math.exp %137 : vector<8x128xf32>
    %cst_41 = arith.constant 1.000000e+00 : f32
    %139 = vector.broadcast %cst_41 : f32 to vector<8x128xf32>
    %140 = arith.addf %139, %138 : vector<8x128xf32>
    %141 = arith.divf %139, %140 : vector<8x128xf32>
    %142 = vector.extract_strided_slice %129 {offsets = [0, 256], sizes = [8, 128], strides = [1, 1]} : vector<8x512xf32> to vector<8x128xf32>
    %143 = math.tanh %142 : vector<8x128xf32>
    %144 = vector.extract_strided_slice %129 {offsets = [0, 384], sizes = [8, 128], strides = [1, 1]} : vector<8x512xf32> to vector<8x128xf32>
    %145 = arith.negf %144 : vector<8x128xf32>
    %146 = math.exp %145 : vector<8x128xf32>
    %cst_42 = arith.constant 1.000000e+00 : f32
    %147 = vector.broadcast %cst_42 : f32 to vector<8x128xf32>
    %148 = arith.addf %147, %146 : vector<8x128xf32>
    %149 = arith.divf %147, %148 : vector<8x128xf32>
    %150 = arith.mulf %141, %122 : vector<8x128xf32>
    %151 = arith.mulf %135, %143 : vector<8x128xf32>
    %152 = arith.addf %150, %151 : vector<8x128xf32>
    %153 = math.tanh %152 : vector<8x128xf32>
    %154 = arith.mulf %149, %153 : vector<8x128xf32>
    %155 = arith.addi %12, %c3_i32 : i32
    %c8_i32_43 = arith.constant 8 : i32
    %156 = arith.cmpi slt, %155, %c8_i32_43 : i32
    %157 = arith.select %156, %154, %121 : vector<8x128xf32>
    %158 = arith.select %156, %152, %122 : vector<8x128xf32>
    %c4_i32 = arith.constant 4 : i32
    %c8_i32_44 = arith.constant 8 : i32
    %159 = arith.muli %c4_i32, %c8_i32_44 : i32
    %160 = tpu.assume_multiple %159, 8 : i32
    %161 = arith.index_cast %160 : i32 to index
    %c0_45 = arith.constant 0 : index
    %162 = vector.load %arg11[%161, %c0_45] : memref<64x512xf32, #tpu.memory_space<vmem>>, vector<8x512xf32>
    %163 = arith.truncf %157 : vector<8x128xf32> to vector<8x128xbf16>
    %cst_46 = arith.constant dense<0.000000e+00> : vector<8x512xf32>
    %164 = tpu.matmul %163, %11, %cst_46 {dimension_numbers = #tpu.dot_dimension_numbers<[1], [0], [0], [1], [0, 0, 1, 1], [], []>} : vector<8x128xbf16>, vector<128x512xbf16>, vector<8x512xf32> -> vector<8x512xf32>
    %165 = arith.addf %162, %164 : vector<8x512xf32>
    %166 = vector.extract_strided_slice %165 {offsets = [0, 0], sizes = [8, 128], strides = [1, 1]} : vector<8x512xf32> to vector<8x128xf32>
    %167 = arith.negf %166 : vector<8x128xf32>
    %168 = math.exp %167 : vector<8x128xf32>
    %cst_47 = arith.constant 1.000000e+00 : f32
    %169 = vector.broadcast %cst_47 : f32 to vector<8x128xf32>
    %170 = arith.addf %169, %168 : vector<8x128xf32>
    %171 = arith.divf %169, %170 : vector<8x128xf32>
    %172 = vector.extract_strided_slice %165 {offsets = [0, 128], sizes = [8, 128], strides = [1, 1]} : vector<8x512xf32> to vector<8x128xf32>
    %173 = arith.negf %172 : vector<8x128xf32>
    %174 = math.exp %173 : vector<8x128xf32>
    %cst_48 = arith.constant 1.000000e+00 : f32
    %175 = vector.broadcast %cst_48 : f32 to vector<8x128xf32>
    %176 = arith.addf %175, %174 : vector<8x128xf32>
    %177 = arith.divf %175, %176 : vector<8x128xf32>
    %178 = vector.extract_strided_slice %165 {offsets = [0, 256], sizes = [8, 128], strides = [1, 1]} : vector<8x512xf32> to vector<8x128xf32>
    %179 = math.tanh %178 : vector<8x128xf32>
    %180 = vector.extract_strided_slice %165 {offsets = [0, 384], sizes = [8, 128], strides = [1, 1]} : vector<8x512xf32> to vector<8x128xf32>
    %181 = arith.negf %180 : vector<8x128xf32>
    %182 = math.exp %181 : vector<8x128xf32>
    %cst_49 = arith.constant 1.000000e+00 : f32
    %183 = vector.broadcast %cst_49 : f32 to vector<8x128xf32>
    %184 = arith.addf %183, %182 : vector<8x128xf32>
    %185 = arith.divf %183, %184 : vector<8x128xf32>
    %186 = arith.mulf %177, %158 : vector<8x128xf32>
    %187 = arith.mulf %171, %179 : vector<8x128xf32>
    %188 = arith.addf %186, %187 : vector<8x128xf32>
    %189 = math.tanh %188 : vector<8x128xf32>
    %190 = arith.mulf %185, %189 : vector<8x128xf32>
    %191 = arith.addi %12, %c4_i32 : i32
    %c8_i32_50 = arith.constant 8 : i32
    %192 = arith.cmpi slt, %191, %c8_i32_50 : i32
    %193 = arith.select %192, %190, %157 : vector<8x128xf32>
    %194 = arith.select %192, %188, %158 : vector<8x128xf32>
    %c5_i32 = arith.constant 5 : i32
    %c8_i32_51 = arith.constant 8 : i32
    %195 = arith.muli %c5_i32, %c8_i32_51 : i32
    %196 = tpu.assume_multiple %195, 8 : i32
    %197 = arith.index_cast %196 : i32 to index
    %c0_52 = arith.constant 0 : index
    %198 = vector.load %arg11[%197, %c0_52] : memref<64x512xf32, #tpu.memory_space<vmem>>, vector<8x512xf32>
    %199 = arith.truncf %193 : vector<8x128xf32> to vector<8x128xbf16>
    %cst_53 = arith.constant dense<0.000000e+00> : vector<8x512xf32>
    %200 = tpu.matmul %199, %11, %cst_53 {dimension_numbers = #tpu.dot_dimension_numbers<[1], [0], [0], [1], [0, 0, 1, 1], [], []>} : vector<8x128xbf16>, vector<128x512xbf16>, vector<8x512xf32> -> vector<8x512xf32>
    %201 = arith.addf %198, %200 : vector<8x512xf32>
    %202 = vector.extract_strided_slice %201 {offsets = [0, 0], sizes = [8, 128], strides = [1, 1]} : vector<8x512xf32> to vector<8x128xf32>
    %203 = arith.negf %202 : vector<8x128xf32>
    %204 = math.exp %203 : vector<8x128xf32>
    %cst_54 = arith.constant 1.000000e+00 : f32
    %205 = vector.broadcast %cst_54 : f32 to vector<8x128xf32>
    %206 = arith.addf %205, %204 : vector<8x128xf32>
    %207 = arith.divf %205, %206 : vector<8x128xf32>
    %208 = vector.extract_strided_slice %201 {offsets = [0, 128], sizes = [8, 128], strides = [1, 1]} : vector<8x512xf32> to vector<8x128xf32>
    %209 = arith.negf %208 : vector<8x128xf32>
    %210 = math.exp %209 : vector<8x128xf32>
    %cst_55 = arith.constant 1.000000e+00 : f32
    %211 = vector.broadcast %cst_55 : f32 to vector<8x128xf32>
    %212 = arith.addf %211, %210 : vector<8x128xf32>
    %213 = arith.divf %211, %212 : vector<8x128xf32>
    %214 = vector.extract_strided_slice %201 {offsets = [0, 256], sizes = [8, 128], strides = [1, 1]} : vector<8x512xf32> to vector<8x128xf32>
    %215 = math.tanh %214 : vector<8x128xf32>
    %216 = vector.extract_strided_slice %201 {offsets = [0, 384], sizes = [8, 128], strides = [1, 1]} : vector<8x512xf32> to vector<8x128xf32>
    %217 = arith.negf %216 : vector<8x128xf32>
    %218 = math.exp %217 : vector<8x128xf32>
    %cst_56 = arith.constant 1.000000e+00 : f32
    %219 = vector.broadcast %cst_56 : f32 to vector<8x128xf32>
    %220 = arith.addf %219, %218 : vector<8x128xf32>
    %221 = arith.divf %219, %220 : vector<8x128xf32>
    %222 = arith.mulf %213, %194 : vector<8x128xf32>
    %223 = arith.mulf %207, %215 : vector<8x128xf32>
    %224 = arith.addf %222, %223 : vector<8x128xf32>
    %225 = math.tanh %224 : vector<8x128xf32>
    %226 = arith.mulf %221, %225 : vector<8x128xf32>
    %227 = arith.addi %12, %c5_i32 : i32
    %c8_i32_57 = arith.constant 8 : i32
    %228 = arith.cmpi slt, %227, %c8_i32_57 : i32
    %229 = arith.select %228, %226, %193 : vector<8x128xf32>
    %230 = arith.select %228, %224, %194 : vector<8x128xf32>
    %c6_i32 = arith.constant 6 : i32
    %c8_i32_58 = arith.constant 8 : i32
    %231 = arith.muli %c6_i32, %c8_i32_58 : i32
    %232 = tpu.assume_multiple %231, 8 : i32
    %233 = arith.index_cast %232 : i32 to index
    %c0_59 = arith.constant 0 : index
    %234 = vector.load %arg11[%233, %c0_59] : memref<64x512xf32, #tpu.memory_space<vmem>>, vector<8x512xf32>
    %235 = arith.truncf %229 : vector<8x128xf32> to vector<8x128xbf16>
    %cst_60 = arith.constant dense<0.000000e+00> : vector<8x512xf32>
    %236 = tpu.matmul %235, %11, %cst_60 {dimension_numbers = #tpu.dot_dimension_numbers<[1], [0], [0], [1], [0, 0, 1, 1], [], []>} : vector<8x128xbf16>, vector<128x512xbf16>, vector<8x512xf32> -> vector<8x512xf32>
    %237 = arith.addf %234, %236 : vector<8x512xf32>
    %238 = vector.extract_strided_slice %237 {offsets = [0, 0], sizes = [8, 128], strides = [1, 1]} : vector<8x512xf32> to vector<8x128xf32>
    %239 = arith.negf %238 : vector<8x128xf32>
    %240 = math.exp %239 : vector<8x128xf32>
    %cst_61 = arith.constant 1.000000e+00 : f32
    %241 = vector.broadcast %cst_61 : f32 to vector<8x128xf32>
    %242 = arith.addf %241, %240 : vector<8x128xf32>
    %243 = arith.divf %241, %242 : vector<8x128xf32>
    %244 = vector.extract_strided_slice %237 {offsets = [0, 128], sizes = [8, 128], strides = [1, 1]} : vector<8x512xf32> to vector<8x128xf32>
    %245 = arith.negf %244 : vector<8x128xf32>
    %246 = math.exp %245 : vector<8x128xf32>
    %cst_62 = arith.constant 1.000000e+00 : f32
    %247 = vector.broadcast %cst_62 : f32 to vector<8x128xf32>
    %248 = arith.addf %247, %246 : vector<8x128xf32>
    %249 = arith.divf %247, %248 : vector<8x128xf32>
    %250 = vector.extract_strided_slice %237 {offsets = [0, 256], sizes = [8, 128], strides = [1, 1]} : vector<8x512xf32> to vector<8x128xf32>
    %251 = math.tanh %250 : vector<8x128xf32>
    %252 = vector.extract_strided_slice %237 {offsets = [0, 384], sizes = [8, 128], strides = [1, 1]} : vector<8x512xf32> to vector<8x128xf32>
    %253 = arith.negf %252 : vector<8x128xf32>
    %254 = math.exp %253 : vector<8x128xf32>
    %cst_63 = arith.constant 1.000000e+00 : f32
    %255 = vector.broadcast %cst_63 : f32 to vector<8x128xf32>
    %256 = arith.addf %255, %254 : vector<8x128xf32>
    %257 = arith.divf %255, %256 : vector<8x128xf32>
    %258 = arith.mulf %249, %230 : vector<8x128xf32>
    %259 = arith.mulf %243, %251 : vector<8x128xf32>
    %260 = arith.addf %258, %259 : vector<8x128xf32>
    %261 = math.tanh %260 : vector<8x128xf32>
    %262 = arith.mulf %257, %261 : vector<8x128xf32>
    %263 = arith.addi %12, %c6_i32 : i32
    %c8_i32_64 = arith.constant 8 : i32
    %264 = arith.cmpi slt, %263, %c8_i32_64 : i32
    %265 = arith.select %264, %262, %229 : vector<8x128xf32>
    %266 = arith.select %264, %260, %230 : vector<8x128xf32>
    %c7_i32 = arith.constant 7 : i32
    %c8_i32_65 = arith.constant 8 : i32
    %267 = arith.muli %c7_i32, %c8_i32_65 : i32
    %268 = tpu.assume_multiple %267, 8 : i32
    %269 = arith.index_cast %268 : i32 to index
    %c0_66 = arith.constant 0 : index
    %270 = vector.load %arg11[%269, %c0_66] : memref<64x512xf32, #tpu.memory_space<vmem>>, vector<8x512xf32>
    %271 = arith.truncf %265 : vector<8x128xf32> to vector<8x128xbf16>
    %cst_67 = arith.constant dense<0.000000e+00> : vector<8x512xf32>
    %272 = tpu.matmul %271, %11, %cst_67 {dimension_numbers = #tpu.dot_dimension_numbers<[1], [0], [0], [1], [0, 0, 1, 1], [], []>} : vector<8x128xbf16>, vector<128x512xbf16>, vector<8x512xf32> -> vector<8x512xf32>
    %273 = arith.addf %270, %272 : vector<8x512xf32>
    %274 = vector.extract_strided_slice %273 {offsets = [0, 0], sizes = [8, 128], strides = [1, 1]} : vector<8x512xf32> to vector<8x128xf32>
    %275 = arith.negf %274 : vector<8x128xf32>
    %276 = math.exp %275 : vector<8x128xf32>
    %cst_68 = arith.constant 1.000000e+00 : f32
    %277 = vector.broadcast %cst_68 : f32 to vector<8x128xf32>
    %278 = arith.addf %277, %276 : vector<8x128xf32>
    %279 = arith.divf %277, %278 : vector<8x128xf32>
    %280 = vector.extract_strided_slice %273 {offsets = [0, 128], sizes = [8, 128], strides = [1, 1]} : vector<8x512xf32> to vector<8x128xf32>
    %281 = arith.negf %280 : vector<8x128xf32>
    %282 = math.exp %281 : vector<8x128xf32>
    %cst_69 = arith.constant 1.000000e+00 : f32
    %283 = vector.broadcast %cst_69 : f32 to vector<8x128xf32>
    %284 = arith.addf %283, %282 : vector<8x128xf32>
    %285 = arith.divf %283, %284 : vector<8x128xf32>
    %286 = vector.extract_strided_slice %273 {offsets = [0, 256], sizes = [8, 128], strides = [1, 1]} : vector<8x512xf32> to vector<8x128xf32>
    %287 = math.tanh %286 : vector<8x128xf32>
    %288 = vector.extract_strided_slice %273 {offsets = [0, 384], sizes = [8, 128], strides = [1, 1]} : vector<8x512xf32> to vector<8x128xf32>
    %289 = arith.negf %288 : vector<8x128xf32>
    %290 = math.exp %289 : vector<8x128xf32>
    %cst_70 = arith.constant 1.000000e+00 : f32
    %291 = vector.broadcast %cst_70 : f32 to vector<8x128xf32>
    %292 = arith.addf %291, %290 : vector<8x128xf32>
    %293 = arith.divf %291, %292 : vector<8x128xf32>
    %294 = arith.mulf %285, %266 : vector<8x128xf32>
    %295 = arith.mulf %279, %287 : vector<8x128xf32>
    %296 = arith.addf %294, %295 : vector<8x128xf32>
    %297 = math.tanh %296 : vector<8x128xf32>
    %298 = arith.mulf %293, %297 : vector<8x128xf32>
    %299 = arith.addi %12, %c7_i32 : i32
    %c8_i32_71 = arith.constant 8 : i32
    %300 = arith.cmpi slt, %299, %c8_i32_71 : i32
    %301 = arith.select %300, %298, %265 : vector<8x128xf32>
    %302 = arith.select %300, %296, %266 : vector<8x128xf32>
    %c8_i32_72 = arith.constant 8 : i32
    %c0_73 = arith.constant 0 : index
    %c0_74 = arith.constant 0 : index
    %303 = vector.load %arg9[%c0_73, %c0_74] : memref<8x128xf32, #tpu.memory_space<vmem>>, vector<8x128xf32>
    tpu.vector_store %arg9[%c0_73, %c0_74], %301 {strides = array<i32>} : memref<8x128xf32, #tpu.memory_space<vmem>>, vector<8x128xf32>,
    %c0_75 = arith.constant 0 : index
    %c0_76 = arith.constant 0 : index
    %304 = vector.load %arg10[%c0_75, %c0_76] : memref<8x128xf32, #tpu.memory_space<vmem>>, vector<8x128xf32>
    tpu.vector_store %arg10[%c0_75, %c0_76], %302 {strides = array<i32>} : memref<8x128xf32, #tpu.memory_space<vmem>>, vector<8x128xf32>,
    %c0_i32_77 = arith.constant 0 : i32
    %305 = arith.cmpi eq, %arg1, %c0_i32_77 : i32
    %306 = arith.extui %305 : i1 to i32
    %c0_i32_78 = arith.constant 0 : i32
    %307 = arith.cmpi ne, %306, %c0_i32_78 : i32
    scf.if %307 {
      %308 = arith.truncf %301 : vector<8x128xf32> to vector<8x128xbf16>
      %c0_79 = arith.constant 0 : index
      %c0_80 = arith.constant 0 : index
      %309 = vector.load %arg6[%c0_79, %c0_80] : memref<128x128xbf16, #tpu.memory_space<vmem>>, vector<128x128xbf16>
      %cst_81 = arith.constant dense<0.000000e+00> : vector<8x128xf32>
      %310 = tpu.matmul %308, %309, %cst_81 {dimension_numbers = #tpu.dot_dimension_numbers<[1], [0], [0], [1], [0, 0, 1, 1], [], []>} : vector<8x128xbf16>, vector<128x128xbf16>, vector<8x128xf32> -> vector<8x128xf32>
      %c0_82 = arith.constant 0 : index
      %c0_83 = arith.constant 0 : index
      %311 = vector.load %arg7[%c0_82, %c0_83] : memref<1x128xf32, #tpu.memory_space<vmem>>, vector<1x128xf32>
      %312 = vector.broadcast %311 : vector<1x128xf32> to vector<8x128xf32>
      %313 = arith.addf %310, %312 : vector<8x128xf32>
      %c0_84 = arith.constant 0 : index
      %c0_85 = arith.constant 0 : index
      %314 = vector.load %arg8[%c0_84, %c0_85] : memref<8x128xf32, #tpu.memory_space<vmem>>, vector<8x128xf32>
      tpu.vector_store %arg8[%c0_84, %c0_85], %313 {strides = array<i32>} : memref<8x128xf32, #tpu.memory_space<vmem>>, vector<8x128xf32>,
    } else {
    }
    return
  }
  func.func @transform_0(%arg0: i32, %arg1: i32) -> (i32, i32, i32) {
    %c0_i32 = arith.constant 0 : i32
    %c0_i32_0 = arith.constant 0 : i32
    return %arg0, %arg1, %c0_i32 : i32, i32, i32
  }
  func.func @transform_1(%arg0: i32, %arg1: i32) -> (i32, i32) {
    %c0_i32 = arith.constant 0 : i32
    %c0_i32_0 = arith.constant 0 : i32
    %c0_i32_1 = arith.constant 0 : i32
    return %c0_i32, %c0_i32_0 : i32, i32
  }
  func.func @transform_2(%arg0: i32, %arg1: i32) -> (i32, i32) {
    %c0_i32 = arith.constant 0 : i32
    %c0_i32_0 = arith.constant 0 : i32
    %c0_i32_1 = arith.constant 0 : i32
    return %c0_i32, %c0_i32_0 : i32, i32
  }
  func.func @transform_3(%arg0: i32, %arg1: i32) -> (i32, i32) {
    %c0_i32 = arith.constant 0 : i32
    %c0_i32_0 = arith.constant 0 : i32
    %c0_i32_1 = arith.constant 0 : i32
    return %c0_i32, %c0_i32_0 : i32, i32
  }
  func.func @transform_4(%arg0: i32, %arg1: i32) -> (i32, i32) {
    %c0_i32 = arith.constant 0 : i32
    %c0_i32_0 = arith.constant 0 : i32
    %c0_i32_1 = arith.constant 0 : i32
    return %c0_i32, %c0_i32_0 : i32, i32
  }
  func.func @transform_5(%arg0: i32, %arg1: i32) -> (i32, i32) {
    %c0_i32 = arith.constant 0 : i32
    %c0_i32_0 = arith.constant 0 : i32
    %c0_i32_1 = arith.constant 0 : i32
    return %c0_i32, %c0_i32_0 : i32, i32
  }
  func.func @transform_6(%arg0: i32, %arg1: i32) -> (i32, i32) {
    %c0_i32 = arith.constant 0 : i32
    %c0_i32_0 = arith.constant 0 : i32
    return %arg0, %c0_i32 : i32, i32
  }
}

</mosaic_0001>

<bundles_post_ra>
// kernel: tpu_custom_call.1
= control target key start
LH: loop header
LB: loop body
LE: loop exit
PB: predicated region body
PF: predicated region fallthrough
CT: control target
= control target key end

     0   :  { %11 = vsyncpa [#allocation6], 0  ;;  %s2738_s0 = inlined_call_operand.vmem [shape: bf16[1,64,16], index: 0, kind: input, shape index: {}]   ;;  %s2739_s1 = inlined_call_operand.vmem [shape: bf16[16,512], index: 1, kind: input, shape index: {}]   ;;  %s2740_s2 = inlined_call_operand.hbm [shape: bf16[128,512], index: 2, kind: input, shape index: {}]   ;;  %s2741_s3 = inlined_call_operand.vmem [shape: f32[1,512], index: 3, kind: input, shape index: {}]   ;;  %s2742_s4 = inlined_call_operand.hbm [shape: bf16[128,128], index: 4, kind: input, shape index: {}]   ;;  %s2743_s5 = inlined_call_operand.vmem [shape: f32[1,128], index: 5, kind: input, shape index: {}]   ;;  %s2744_s6 = inlined_call_operand.hbm [shape: f32[8,128], index: 6, kind: output, shape index: {}]  }
   0x1   :  { %12 = vsyncpa [#allocation9], 0 }
   0x2   :  { %13 = vsyncpa [#allocation7], 0  ;;  %s2078_s21 = smov [#allocation5]   ;;  %s2006_s25 = scalar_lea.hbm %s2740_s2, 4096 }
   0x3   :  { %s23_s22 = sshll.u32 %s2078_s21, 4  ;;  %p2007_p0 = scmp.ne.s32.totalorder %s2740_s2, %s2006_s25  ;;  %s24_s22 = int_to_ptr.vmem [resolvable:$true] %s23_s22 }
   0x4   :  { %p2010_p1 = scmp.lt.u32.totalorder %s2006_s25, %s2740_s2 }
   0x6   :  { %p2012_p2 = pnand %p2010_p1, %p2007_p0 }
   0x8   :  { %2015 = shalt.err (!%p2012_p2)
}
   0x9   :  { %s2016_s30 = scalar_lea.vmem %s24_s22, 4096  ;;  %p2021_p4 = scmp.lt.s32.totalorder %s24_s22, %s24_s22 }
   0xa   :  { %p2017_p3 = scmp.ne.s32.totalorder %s24_s22, %s2016_s30  ;;  %p2022_p5 = scmp.lt.s32.totalorder %s2016_s30, %s2016_s30 }
   0xc   :  { %p2023_p6 = por %p2022_p5, %p2021_p4 }
   0xe   :  { %p2024_p7 = pnand %p2023_p6, %p2017_p3 }
  0x10   :  { %2027 = shalt.err (!%p2024_p7)
}
  0x11   :  { %s2079_s7 = smov 256   ;;  %s2080_s8 = smov 16  }
  0x12   :  { %29 = dma.hbm_to_vmem [thread:$0]  %s2740_s2, 4096, %s24_s22, [#allocation6], %s2079_s7, %s2079_s7, %s2080_s8  }
  0x13   :  { %s2081_s11 = smov [#allocation8]   ;;  %s2028_s15 = scalar_lea.hbm %s2742_s4, 1024 }
  0x14   :  { %s37_s12 = sshll.u32 %s2081_s11, 4  ;;  %p2029_p8 = scmp.ne.s32.totalorder %s2742_s4, %s2028_s15  ;;  %s38_s12 = int_to_ptr.vmem [resolvable:$true] %s37_s12 }
  0x15   :  { %p2032_p9 = scmp.lt.u32.totalorder %s2028_s15, %s2742_s4 }
  0x17   :  { %p2034_p10 = pnand %p2032_p9, %p2029_p8 }
  0x19   :  { %2037 = shalt.err (!%p2034_p10)
}
  0x1a   :  { %s2038_s20 = scalar_lea.vmem %s38_s12, 1024  ;;  %p2043_p12 = scmp.lt.s32.totalorder %s38_s12, %s38_s12 }
  0x1b   :  { %p2039_p11 = scmp.ne.s32.totalorder %s38_s12, %s2038_s20  ;;  %p2044_p13 = scmp.lt.s32.totalorder %s2038_s20, %s2038_s20 }
  0x1d   :  { %p2045_p0 = por %p2044_p13, %p2043_p12 }
  0x1f   :  { %p2046_p1 = pnand %p2045_p0, %p2039_p11 }
  0x21   :  { %2049 = shalt.err (!%p2046_p1)
}
  0x22   :  { %s2082_s2 = smov 64   ;;  %s2083_s21 = smov 4  }
  0x23   :  { %43 = dma.hbm_to_vmem [thread:$0]  %s2742_s4, 1024, %s38_s12, [#allocation9], %s2082_s2, %s2082_s2, %s2083_s21  }
  0x24   :  { %2072 = dma.done.wait [#allocation6], 4096  }
  0x25   :  { %2073 = vsyncadd [#allocation6], 4294963200 }
  0x26   :  { %2074 = dma.done.wait [#allocation9], 1024  }
  0x27   :  { %2075 = vsyncadd [#allocation9], 4294966272  ;;  %v2745_v0 = vmov 0   ;;  %v1780_v1 = vld [vmem:[%s2739_s1 + $0x4] ss:$16 sps:$4 sm:$0xff]   ;;  %vm133_vm0 = vcmask 130048   ;;  %v73_v42 = vlaneseq }
  0x28   :  { %178 = vmatprep.mubr.bf16.mxu0 %v2745_v0  ;;  %251 = vmatprep.mubr.bf16.mxu1 %v2745_v0  ;;  %v1782_v2 = vld [vmem:[%s2739_s1 + $0xc] ss:$16 sps:$4 sm:$0xff]   ;;  %v1784_v3 = vld [vmem:[%s2739_s1] ss:$16 sps:$4 sm:$0xff]   ;;  %v1785_v4 = vld [vmem:[%s2739_s1 + $0x8] ss:$16 sps:$4 sm:$0xff]  }
  0x29   :  { %146 = vmatprep.subr.bf16.mxu0 %v1780_v1  ;;  %219 = vmatprep.subr.bf16.mxu1 %v1782_v2  ;;  %v1786_v5 = vld [vmem:[%s2738_s0] sm:$0xff]   ;;  %v2167_v7 = vld [vmem:[#allocation5 + $0xc] ss:$16 sps:$4 sm:$0xff]   ;;  %v2172_v9 = vld [vmem:[#allocation5 + $0x8] ss:$16 sps:$4 sm:$0xff]   ;;  %v2085_v41 = vmov 0.0|0.0  }
  0x2a   :  { %147 = vmatpush1.bf16.msra.mxu0 %v1784_v3  ;;  %220 = vmatpush1.bf16.msra.mxu1 %v1785_v4  ;;  %v2165_v6 = vld [vmem:[#allocation5 + $0x4] ss:$16 sps:$4 sm:$0xff]   ;;  %v2169_v8 = vld [vmem:[#allocation5] ss:$16 sps:$4 sm:$0xff]   ;;  %v2180_v11 = vld [vmem:[#allocation5 + $0x2c] ss:$16 sps:$4 sm:$0xff]  }
  0x2b   :  { %527 = vmatprep.subr.bf16.mxu0 %v2165_v6  ;;  %v2176_v10 = vld [vmem:[#allocation5 + $0x24] ss:$16 sps:$4 sm:$0xff]   ;;  %568 = vmatprep.subr.bf16.mxu1 %v2167_v7  ;;  %v2182_v12 = vld [vmem:[#allocation5 + $0x20] ss:$16 sps:$4 sm:$0xff]   ;;  %v2184_v13 = vld [vmem:[#allocation5 + $0x28] ss:$16 sps:$4 sm:$0xff]  }
  0x2c   :  { %v1799_v14 = vld [vmem:[%s2738_s0 + $0x8] sm:$0xff]   ;;  %v2193_v15 = vld [vmem:[#allocation5 + $0x44] ss:$16 sps:$4 sm:$0xff]   ;;  %v2199_v17 = vld [vmem:[#allocation5 + $0x40] ss:$16 sps:$4 sm:$0xff]   ;;  %v74_v43 = vshrl.u32 %v73_v42, 7 }
  0x2d   :  { %1667 = vmatmul.mubr.msk.bf16.vlgmr.msra.gmra.mrb[0].mxu0 %vm133_vm0, %v1786_v5  ;;  %1671 = vmatmul.mubr.msk.bf16.vlgmr.msra.gmra.mrb[0].mxu1 %vm133_vm0, %v1786_v5  ;;  %v2196_v16 = vld [vmem:[#allocation5 + $0x4c] ss:$16 sps:$4 sm:$0xff]   ;;  %v2201_v18 = vld [vmem:[#allocation5 + $0x48] ss:$16 sps:$4 sm:$0xff]   ;;  %v2205_v19 = vld [vmem:[#allocation5 + $0x64] ss:$16 sps:$4 sm:$0xff]  }
  0x2e   :  { %528 = vmatpush1.bf16.msra.mxu0 %v2169_v8  ;;  %569 = vmatpush1.bf16.msra.mxu1 %v2172_v9  ;;  %v2208_v20 = vld [vmem:[#allocation5 + $0x6c] ss:$16 sps:$4 sm:$0xff]   ;;  %v2212_v21 = vld [vmem:[#allocation5 + $0x60] ss:$16 sps:$4 sm:$0xff]   ;;  %v2215_v22 = vld [vmem:[#allocation5 + $0x68] ss:$16 sps:$4 sm:$0xff]  }
  0x2f   :  { %529 = vmatprep.subr.bf16.mxu0 %v2176_v10  ;;  %570 = vmatprep.subr.bf16.mxu1 %v2180_v11  ;;  %v2220_v23 = vld [vmem:[#allocation5 + $0x84] ss:$16 sps:$4 sm:$0xff]   ;;  %v2224_v24 = vld [vmem:[#allocation5 + $0x8c] ss:$16 sps:$4 sm:$0xff]   ;;  %v2230_v26 = vld [vmem:[#allocation5 + $0x80] ss:$16 sps:$4 sm:$0xff]  }
  0x30   :  { %188 = vmatprep.mubr.bf16.mxu0 %v2745_v0  ;;  %261 = vmatprep.mubr.bf16.mxu1 %v2745_v0  ;;  %v1812_v25 = vld [vmem:[%s2738_s0 + $0x10] sm:$0xff]   ;;  %v2234_v27 = vld [vmem:[#allocation5 + $0x88] ss:$16 sps:$4 sm:$0xff]   ;;  %v2239_v29 = vld [vmem:[#allocation5 + $0xac] ss:$16 sps:$4 sm:$0xff]   ;;  %v83_v44 = vsub.s32 2, %v74_v43 }
  0x31   :  { %v2236_v28 = vld [vmem:[#allocation5 + $0xa4] ss:$16 sps:$4 sm:$0xff]   ;;  %v2244_v30 = vld [vmem:[#allocation5 + $0xa0] ss:$16 sps:$4 sm:$0xff]   ;;  %v2246_v31 = vld [vmem:[#allocation5 + $0xa8] ss:$16 sps:$4 sm:$0xff]  }
  0x32   :  { %530 = vmatpush1.bf16.msra.mxu0 %v2182_v12  ;;  %571 = vmatpush1.bf16.msra.mxu1 %v2184_v13  ;;  %v1825_v32 = vld [vmem:[%s2738_s0 + $0x18] sm:$0xff]   ;;  %v2254_v33 = vld [vmem:[#allocation5 + $0xc4] ss:$16 sps:$4 sm:$0xff]   ;;  %v2260_v35 = vld [vmem:[#allocation5 + $0xc0] ss:$16 sps:$4 sm:$0xff]   ;;  %v87_v45 = vsub.s32 3, %v74_v43 }
  0x33   :  { %531 = vmatprep.subr.bf16.mxu0 %v2193_v15  ;;  %572 = vmatprep.subr.bf16.mxu1 %v2196_v16  ;;  %v2258_v34 = vld [vmem:[#allocation5 + $0xcc] ss:$16 sps:$4 sm:$0xff]   ;;  %v2262_v36 = vld [vmem:[#allocation5 + $0xc8] ss:$16 sps:$4 sm:$0xff]   ;;  %v2264_v37 = vld [vmem:[#allocation5 + $0xe4] ss:$16 sps:$4 sm:$0xff]  }
  0x34   :  { %v2267_v38 = vld [vmem:[#allocation5 + $0xec] ss:$16 sps:$4 sm:$0xff]   ;;  %v2272_v39 = vld [vmem:[#allocation5 + $0xe0] ss:$16 sps:$4 sm:$0xff]   ;;  %v2280_v40 = vld [vmem:[#allocation5 + $0xe8] ss:$16 sps:$4 sm:$0xff]  }
  0x35   :  { %1668 = vmatmul.mubr.msk.bf16.gmra.mrb[4].mxu0 %vm133_vm0, %v1799_v14  ;;  %1672 = vmatmul.mubr.msk.bf16.gmra.mrb[4].mxu1 %vm133_vm0, %v1799_v14  ;;  %v75_v46 = vsub.s32 0, %v74_v43  ;;  %v71_v47 = vld [vmem:[%s2741_s3] sm:$0xf]  ;;  %v79_v48 = vsub.s32 1, %v74_v43  ;;  %vm2087_vm1 = vmmov 0   ;;  %s2088_s16 = smov [#allocation10]  }
  0x36   :  { %532 = vmatpush1.bf16.msra.mxu0 %v2199_v17  ;;  %198 = vmatprep.mubr.bf16.mxu0 %v2745_v0  ;;  %v2325_v49 = vrot.slane %v71_v47, %v83_v44  ;;  %v2331_v52 = vrot.slane %v71_v47, %v87_v45  ;;  %s1642_s17 = sshll.u32 %s2088_s16, 4  ;;  %s1643_s17 = int_to_ptr.vmem [resolvable:$true] %s1642_s17 }
  0x37   :  { %573 = vmatpush1.bf16.msra.mxu1 %v2201_v18  ;;  %533 = vmatprep.subr.bf16.mxu0 %v2205_v19  ;;  %v76_v53 = vrot.slane %v71_v47, %v75_v46  ;;  %v80_v56 = vrot.slane %v71_v47, %v79_v48  ;;  %s2050_s18 = scalar_lea.vmem %s1643_s17, 128  ;;  %p2055_p3 = scmp.lt.s32.totalorder %s1643_s17, %s1643_s17 }
  0x38   :  { %574 = vmatprep.subr.bf16.mxu1 %v2208_v20  ;;  %271 = vmatprep.mubr.bf16.mxu1 %v2745_v0  ;;  %p2051_p2 = scmp.ne.s32.totalorder %s1643_s17, %s2050_s18  ;;  %p2056_p4 = scmp.lt.s32.totalorder %s2050_s18, %s2050_s18 }
  0x3a   :  { %534 = vmatpush1.bf16.msra.mxu0 %v2212_v21  ;;  %p2057_p5 = por %p2056_p4, %p2055_p3 }
  0x3b   :  { %575 = vmatpush1.bf16.msra.mxu1 %v2215_v22  ;;  %535 = vmatprep.subr.bf16.mxu0 %v2220_v23 }
  0x3c   :  { %576 = vmatprep.subr.bf16.mxu1 %v2224_v24  ;;  %p2058_p6 = pnand %p2057_p5, %p2051_p2 }
  0x3d   :  { %1669 = vmatmul.mubr.msk.bf16.gmra.mrb[8].mxu0 %vm133_vm0, %v1812_v25  ;;  %1673 = vmatmul.mubr.msk.bf16.gmra.mrb[8].mxu1 %vm133_vm0, %v1812_v25 }
  0x3e   :  { %536 = vmatpush1.bf16.msra.mxu0 %v2230_v26  ;;  %208 = vmatprep.mubr.bf16.mxu0 %v2745_v0 }
  0x3f   :  { %577 = vmatpush1.bf16.msra.mxu1 %v2234_v27  ;;  %537 = vmatprep.subr.bf16.mxu0 %v2236_v28 }
  0x40   :  { %578 = vmatprep.subr.bf16.mxu1 %v2239_v29  ;;  %281 = vmatprep.mubr.bf16.mxu1 %v2745_v0 }
  0x42   :  { %538 = vmatpush1.bf16.msra.mxu0 %v2244_v30 }
  0x43   :  { %579 = vmatpush1.bf16.msra.mxu1 %v2246_v31  ;;  %539 = vmatprep.subr.bf16.mxu0 %v2254_v33 }
  0x44   :  { %580 = vmatprep.subr.bf16.mxu1 %v2258_v34 }
  0x45   :  { %1670 = vmatmul.mubr.msk.bf16.gmra.mrb[12].mxu0 %vm133_vm0, %v1825_v32  ;;  %1674 = vmatmul.mubr.msk.bf16.gmra.mrb[12].mxu1 %vm133_vm0, %v1825_v32 }
  0x46   :  { %540 = vmatpush1.bf16.msra.mxu0 %v2260_v35  ;;  %559 = vmatprep.mubr.bf16.mxu0 %v2745_v0 }
  0x47   :  { %581 = vmatpush1.bf16.msra.mxu1 %v2262_v36  ;;  %541 = vmatprep.subr.bf16.mxu0 %v2264_v37 }
  0x48   :  { %582 = vmatprep.subr.bf16.mxu1 %v2267_v38  ;;  %600 = vmatprep.mubr.bf16.mxu1 %v2745_v0 }
  0x4a   :  { %542 = vmatpush1.bf16.msra.mxu0 %v2272_v39 }
  0x4b   :  { %583 = vmatpush1.bf16.msra.mxu1 %v2280_v40  ;;  %651 = vmatprep.subr.bf16.mxu0 %v2165_v6 }
  0x4c   :  { %692 = vmatprep.subr.bf16.mxu1 %v2167_v7 }
  0x4d   :  { %560 = vmatmul.mubr.bf16.vlgmr.msra.gmra.mrb[16].mxu0 %v2085_v41 }
  0x4e   :  { %601 = vmatmul.mubr.bf16.vlgmr.msra.gmra.mrb[16].mxu1 %v2085_v41  ;;  %652 = vmatpush1.bf16.msra.mxu0 %v2169_v8 }
  0x4f   :  { %693 = vmatpush1.bf16.msra.mxu1 %v2172_v9  ;;  %653 = vmatprep.subr.bf16.mxu0 %v2176_v10 }
  0x50   :  { %694 = vmatprep.subr.bf16.mxu1 %v2180_v11  ;;  %683 = vmatprep.mubr.bf16.mxu0 %v2745_v0 }
  0x51   :  { %724 = vmatprep.mubr.bf16.mxu1 %v2745_v0 }
  0x52   :  { %654 = vmatpush1.bf16.msra.mxu0 %v2182_v12 }
  0x53   :  { %695 = vmatpush1.bf16.msra.mxu1 %v2184_v13  ;;  %655 = vmatprep.subr.bf16.mxu0 %v2193_v15 }
  0x54   :  { %696 = vmatprep.subr.bf16.mxu1 %v2196_v16 }
  0x56   :  { %656 = vmatpush1.bf16.msra.mxu0 %v2199_v17 }
  0x57   :  { %697 = vmatpush1.bf16.msra.mxu1 %v2201_v18  ;;  %657 = vmatprep.subr.bf16.mxu0 %v2205_v19 }
  0x58   :  { %698 = vmatprep.subr.bf16.mxu1 %v2208_v20 }
  0x5a   :  { %658 = vmatpush1.bf16.msra.mxu0 %v2212_v21 }
  0x5b   :  { %699 = vmatpush1.bf16.msra.mxu1 %v2215_v22  ;;  %659 = vmatprep.subr.bf16.mxu0 %v2220_v23 }
  0x5c   :  { %700 = vmatprep.subr.bf16.mxu1 %v2224_v24 }
  0x5e   :  { %660 = vmatpush1.bf16.msra.mxu0 %v2230_v26 }
  0x5f   :  { %701 = vmatpush1.bf16.msra.mxu1 %v2234_v27  ;;  %661 = vmatprep.subr.bf16.mxu0 %v2236_v28 }
  0x60   :  { %702 = vmatprep.subr.bf16.mxu1 %v2239_v29 }
  0x62   :  { %662 = vmatpush1.bf16.msra.mxu0 %v2244_v30 }
  0x63   :  { %703 = vmatpush1.bf16.msra.mxu1 %v2246_v31  ;;  %663 = vmatprep.subr.bf16.mxu0 %v2254_v33 }
  0x64   :  { %704 = vmatprep.subr.bf16.mxu1 %v2258_v34 }
  0x66   :  { %664 = vmatpush1.bf16.msra.mxu0 %v2260_v35 }
  0x67   :  { %705 = vmatpush1.bf16.msra.mxu1 %v2262_v36  ;;  %665 = vmatprep.subr.bf16.mxu0 %v2264_v37 }
  0x68   :  { %706 = vmatprep.subr.bf16.mxu1 %v2267_v38 }
  0x6a   :  { %666 = vmatpush1.bf16.msra.mxu0 %v2272_v39 }
  0x6b   :  { %707 = vmatpush1.bf16.msra.mxu1 %v2280_v40  ;;  %776 = vmatprep.subr.bf16.mxu0 %v2165_v6 }
  0x6c   :  { %817 = vmatprep.subr.bf16.mxu1 %v2167_v7 }
 0x100   :  { %v2327_v50 = vpop.f32.mrb[0].mxu0  ;;  %v2329_v51 = vpop.f32.mrb[0].mxu1 }
 0x101   :  { %v182_v54 = vpop.f32.mrb[1].mxu0  ;;  %v255_v55 = vpop.f32.mrb[1].mxu1 }
 0x102   :  { %v184_v57 = vpop.f32.mrb[2].mxu0  ;;  %v257_v58 = vpop.f32.mrb[2].mxu1 }
 0x103   :  { %v2333_v59 = vadd.f32 %v184_v57, %v76_v53  ;;  %v186_v60 = vpop.f32.mrb[3].mxu0  ;;  %v2336_v61 = vadd.f32 %v257_v58, %v2325_v49  ;;  %v259_v62 = vpop.f32.mrb[3].mxu1 }
 0x104   :  { %v2338_v63 = vadd.f32 %v186_v60, %v80_v56  ;;  %v2341_v1 = vadd.f32 %v259_v62, %v2331_v52 }
 0x108   :  { %v190_v2 = vpop.f32.mrb[4].mxu0  ;;  %v263_v3 = vpop.f32.mrb[4].mxu1 }
 0x109   :  { %v2343_v4 = vadd.f32 %v190_v2, %v76_v53  ;;  %v192_v5 = vpop.f32.mrb[5].mxu0  ;;  %v2346_v14 = vadd.f32 %v263_v3, %v2325_v49  ;;  %v265_v25 = vpop.f32.mrb[5].mxu1 }
 0x10a   :  { %v2348_v32 = vadd.f32 %v192_v5, %v80_v56  ;;  %v194_v41 = vpop.f32.mrb[6].mxu0  ;;  %v2351_v42 = vadd.f32 %v265_v25, %v2331_v52  ;;  %v267_v43 = vpop.f32.mrb[6].mxu1 }
 0x10b   :  { %v2353_v44 = vadd.f32 %v194_v41, %v76_v53  ;;  %v196_v45 = vpop.f32.mrb[7].mxu0  ;;  %v2356_v46 = vadd.f32 %v267_v43, %v2325_v49  ;;  %v269_v47 = vpop.f32.mrb[7].mxu1 }
 0x10c   :  { %2747 = vst [vmem:[#allocation14_spill] sm:$0xff] %v2351_v42  ;;  %v2358_v48 = vadd.f32 %v196_v45, %v80_v56  ;;  %v2361_v57 = vadd.f32 %v269_v47, %v2331_v52 }
 0x10d   :  { %2748 = vst [vmem:[#allocation15_spill] sm:$0xff] %v2353_v44  ;;  %2749 = vst [vmem:[#allocation16_spill] sm:$0xff] %v2356_v46 }
 0x10e   :  { %2750 = vst [vmem:[#allocation17_spill] sm:$0xff] %v2358_v48  ;;  %2751 = vst [vmem:[#allocation18_spill] sm:$0xff] %v2361_v57 }
 0x110   :  { %v200_v58 = vpop.f32.mrb[8].mxu0  ;;  %v273_v60 = vpop.f32.mrb[8].mxu1 }
 0x111   :  { %v2363_v62 = vadd.f32 %v200_v58, %v76_v53  ;;  %v202_v2 = vpop.f32.mrb[9].mxu0  ;;  %v2366_v3 = vadd.f32 %v273_v60, %v2325_v49  ;;  %v275_v5 = vpop.f32.mrb[9].mxu1 }
 0x112   :  { %v2368_v25 = vadd.f32 %v202_v2, %v80_v56  ;;  %v204_v41 = vpop.f32.mrb[10].mxu0  ;;  %v2371_v43 = vadd.f32 %v275_v5, %v2331_v52  ;;  %v277_v45 = vpop.f32.mrb[10].mxu1 }
 0x113   :  { %2752 = vst [vmem:[#allocation19_spill] sm:$0xff] %v2363_v62  ;;  %2753 = vst [vmem:[#allocation20_spill] sm:$0xff] %v2366_v3  ;;  %v2373_v0 = vadd.f32 %v204_v41, %v76_v53  ;;  %v206_v47 = vpop.f32.mrb[11].mxu0  ;;  %v2376_v57 = vadd.f32 %v277_v45, %v2325_v49  ;;  %v279_v58 = vpop.f32.mrb[11].mxu1 }
 0x114   :  { %2754 = vst [vmem:[#allocation21_spill] sm:$0xff] %v2368_v25  ;;  %2755 = vst [vmem:[#allocation22_spill] sm:$0xff] %v2371_v43  ;;  %v2378_v62 = vadd.f32 %v206_v47, %v80_v56  ;;  %v2381_v60 = vadd.f32 %v279_v58, %v2331_v52 }
 0x115   :  { %2756 = vst [vmem:[#allocation23_spill] sm:$0xff] %v2373_v0  ;;  %2757 = vst [vmem:[#allocation24_spill] sm:$0xff] %v2376_v57 }
 0x116   :  { %2758 = vst [vmem:[#allocation25_spill] sm:$0xff] %v2378_v62  ;;  %2759 = vst [vmem:[#allocation26_spill] sm:$0xff] %v2381_v60 }
 0x118   :  { %v210_v3 = vpop.f32.mrb[12].mxu0  ;;  %v283_v2 = vpop.f32.mrb[12].mxu1 }
 0x119   :  { %v2383_v25 = vadd.f32 %v210_v3, %v76_v53  ;;  %v212_v48 = vpop.f32.mrb[13].mxu0  ;;  %v2386_v5 = vadd.f32 %v283_v2, %v2325_v49  ;;  %v285_v41 = vpop.f32.mrb[13].mxu1 }
 0x11a   :  { %v2388_v0 = vadd.f32 %v212_v48, %v80_v56  ;;  %v214_v43 = vpop.f32.mrb[14].mxu0  ;;  %v2391_v45 = vadd.f32 %v285_v41, %v2331_v52  ;;  %v287_v47 = vpop.f32.mrb[14].mxu1  ;;  %v181_v48 = vadd.f32 %v2327_v50, %v76_v53  ;;  %v254_v41 = vadd.f32 %v2329_v51, %v2325_v49 }
 0x11b   :  { %2760 = vst [vmem:[#allocation27_spill] sm:$0xff] %v2383_v25  ;;  %2761 = vst [vmem:[#allocation28_spill] sm:$0xff] %v2386_v5  ;;  %v2393_v62 = vadd.f32 %v214_v43, %v76_v53  ;;  %v216_v58 = vpop.f32.mrb[15].mxu0  ;;  %v2396_v60 = vadd.f32 %v287_v47, %v2325_v49  ;;  %v289_v3 = vpop.f32.mrb[15].mxu1  ;;  %v256_v43 = vadd.f32 %v255_v55, %v2331_v52 }
 0x11c   :  { %2762 = vst [vmem:[#allocation29_spill] sm:$0xff] %v2388_v0  ;;  %2763 = vst [vmem:[#allocation30_spill] sm:$0xff] %v2391_v45  ;;  %v2398_v25 = vadd.f32 %v216_v58, %v80_v56  ;;  %v2401_v2 = vadd.f32 %v289_v3, %v2331_v52  ;;  %v183_v0 = vadd.f32 %v182_v54, %v80_v56 }
 0x11d   :  { %2764 = vst [vmem:[#allocation31_spill] sm:$0xff] %v2393_v62  ;;  %2765 = vst [vmem:[#allocation32_spill] sm:$0xff] %v2396_v60 }
 0x11e   :  { %2766 = vst [vmem:[#allocation33_spill] sm:$0xff] %v2398_v25  ;;  %2767 = vst [vmem:[#allocation34_spill] sm:$0xff] %v2401_v2 }
 0x120   :  { %v561_v45 = vpop.f32.mrb[16].mxu0 }
 0x121   :  { %v609_v62 = vadd.f32 %v561_v45, %v181_v48  ;;  %v602_v5 = vpop.f32.mrb[16].mxu1  ;;  %v563_v57 = vpop.f32.mrb[17].mxu0 }
 0x122   :  { %v611_v47 = vadd.f32 %v602_v5, %v254_v41  ;;  %v610_v60 = vadd.f32 %v563_v57, %v183_v0  ;;  %v604_v46 = vpop.f32.mrb[17].mxu1  ;;  %v565_v58 = vpop.f32.mrb[18].mxu0 }
 0x123   :  { %v1707_v25 = vmul.f32 -1.442695, %v609_v62  ;;  %v612_v44 = vadd.f32 %v604_v46, %v256_v43  ;;  %v566_v3 = vpop.f32.mrb[19].mxu0  ;;  %v606_v2 = vpop.f32.mrb[18].mxu1 }
 0x124   :  { %v1708_v42 = vmul.f32 -1.442695, %v610_v60  ;;  %v607_v50 = vpop.f32.mrb[19].mxu1  ;;  %v2768_v2 = vmov 0  }
 0x125   :  { %1846 = vpow2.f32 %v1707_v25  ;;  %v1709_v53 = vmul.f32 -1.442695, %v612_v44 }
 0x126   :  { %1848 = vpow2.f32 %v1708_v42 }
 0x127   :  { %1850 = vpow2.f32 %v1709_v53 }
 0x128   :  { %1852 = vtanh.f32 %v611_v47 }
 0x12f   :  { %v1847_v49 = vpop.eup %1846 }
 0x130   :  { %v1849_v51 = vpop.eup %1848  ;;  %v616_v54 = vadd.f32 1.0, %v1847_v49 }
 0x131   :  { %v622_v52 = vadd.f32 1.0, %v1849_v51  ;;  %v1851_v0 = vpop.eup %1850 }
 0x132   :  { %1854 = vrcp.f32 %v616_v54  ;;  %v1853_v55 = vpop.eup %1852  ;;  %v629_v62 = vadd.f32 1.0, %v1851_v0 }
 0x133   :  { %1856 = vrcp.f32 %v622_v52 }
 0x134   :  { %1858 = vrcp.f32 %v629_v62 }
 0x13c   :  { %v1855_v56 = vpop.eup %1854 }
 0x13d   :  { %v1857_v57 = vpop.eup %1856  ;;  %v633_v46 = vmul.f32 %v1855_v56, %v1853_v55 }
 0x13e   :  { %v632_v5 = vmul.f32 0.0, %v1857_v57  ;;  %v1859_v42 = vpop.eup %1858 }
 0x140   :  { %v2407_v60 = vadd.f32 %v633_v46, %v632_v5 }
 0x142   :  { %1860 = vtanh.f32 %v2407_v60 }
 0x14c   :  { %v1861_v44 = vpop.eup %1860 }
 0x14d   :  { %v636_v25 = vmul.f32 %v1861_v44, %v1859_v42 }
 0x14f   :  { %v650_v45 = vpack.c.bf16 %v636_v25, %v636_v25 }
 0x151   :  { %684 = vmatmul.mubr.bf16.vlgmr.msra.gmra.mrb[20].mxu0 %v650_v45  ;;  %725 = vmatmul.mubr.bf16.vlgmr.msra.gmra.mrb[20].mxu1 %v650_v45 }
 0x152   :  { %777 = vmatpush1.bf16.msra.mxu0 %v2169_v8  ;;  %818 = vmatpush1.bf16.msra.mxu1 %v2172_v9 }
 0x153   :  { %778 = vmatprep.subr.bf16.mxu0 %v2176_v10  ;;  %819 = vmatprep.subr.bf16.mxu1 %v2180_v11 }
 0x154   :  { %808 = vmatprep.mubr.bf16.mxu0 %v2768_v2  ;;  %849 = vmatprep.mubr.bf16.mxu1 %v2768_v2 }
 0x156   :  { %779 = vmatpush1.bf16.msra.mxu0 %v2182_v12  ;;  %820 = vmatpush1.bf16.msra.mxu1 %v2184_v13 }
 0x157   :  { %780 = vmatprep.subr.bf16.mxu0 %v2193_v15  ;;  %821 = vmatprep.subr.bf16.mxu1 %v2196_v16 }
 0x15a   :  { %781 = vmatpush1.bf16.msra.mxu0 %v2199_v17  ;;  %822 = vmatpush1.bf16.msra.mxu1 %v2201_v18 }
 0x15b   :  { %782 = vmatprep.subr.bf16.mxu0 %v2205_v19  ;;  %823 = vmatprep.subr.bf16.mxu1 %v2208_v20 }
 0x15e   :  { %783 = vmatpush1.bf16.msra.mxu0 %v2212_v21  ;;  %824 = vmatpush1.bf16.msra.mxu1 %v2215_v22 }
 0x15f   :  { %784 = vmatprep.subr.bf16.mxu0 %v2220_v23  ;;  %825 = vmatprep.subr.bf16.mxu1 %v2224_v24 }
 0x162   :  { %785 = vmatpush1.bf16.msra.mxu0 %v2230_v26  ;;  %826 = vmatpush1.bf16.msra.mxu1 %v2234_v27 }
 0x163   :  { %786 = vmatprep.subr.bf16.mxu0 %v2236_v28  ;;  %827 = vmatprep.subr.bf16.mxu1 %v2239_v29 }
 0x166   :  { %787 = vmatpush1.bf16.msra.mxu0 %v2244_v30  ;;  %828 = vmatpush1.bf16.msra.mxu1 %v2246_v31 }
 0x167   :  { %788 = vmatprep.subr.bf16.mxu0 %v2254_v33  ;;  %829 = vmatprep.subr.bf16.mxu1 %v2258_v34 }
 0x16a   :  { %789 = vmatpush1.bf16.msra.mxu0 %v2260_v35  ;;  %830 = vmatpush1.bf16.msra.mxu1 %v2262_v36 }
 0x16b   :  { %790 = vmatprep.subr.bf16.mxu0 %v2264_v37  ;;  %831 = vmatprep.subr.bf16.mxu1 %v2267_v38 }
 0x16e   :  { %791 = vmatpush1.bf16.msra.mxu0 %v2272_v39  ;;  %832 = vmatpush1.bf16.msra.mxu1 %v2280_v40 }
 0x16f   :  { %901 = vmatprep.subr.bf16.mxu0 %v2165_v6  ;;  %942 = vmatprep.subr.bf16.mxu1 %v2167_v7 }
 0x224   :  { %v685_v48 = vpop.f32.mrb[20].mxu0  ;;  %v726_v41 = vpop.f32.mrb[20].mxu1 }
 0x225   :  { %v733_v43 = vadd.f32 %v685_v48, %v2333_v59  ;;  %v735_v47 = vadd.f32 %v726_v41, %v2336_v61  ;;  %v687_v58 = vpop.f32.mrb[21].mxu0  ;;  %v728_v3 = vpop.f32.mrb[21].mxu1 }
 0x226   :  { %v734_v50 = vadd.f32 %v687_v58, %v2338_v63  ;;  %v736_v53 = vadd.f32 %v728_v3, %v2341_v1  ;;  %v689_v49 = vpop.f32.mrb[22].mxu0  ;;  %v730_v51 = vpop.f32.mrb[22].mxu1 }
 0x227   :  { %v1710_v54 = vmul.f32 -1.442695, %v733_v43  ;;  %v690_v52 = vpop.f32.mrb[23].mxu0  ;;  %v731_v0 = vpop.f32.mrb[23].mxu1 }
 0x228   :  { %v1711_v55 = vmul.f32 -1.442695, %v734_v50  ;;  %v1712_v56 = vmul.f32 -1.442695, %v736_v53 }
 0x229   :  { %1862 = vpow2.f32 %v1710_v54  ;;  %v2769_v54 = vld [vmem:[#allocation14_spill] sm:$0xff] }
 0x22a   :  { %1864 = vpow2.f32 %v1711_v55 }
 0x22b   :  { %1866 = vpow2.f32 %v1712_v56 }
 0x22c   :  { %1868 = vtanh.f32 %v735_v47 }
 0x233   :  { %v1863_v57 = vpop.eup %1862 }
 0x234   :  { %v1865_v46 = vpop.eup %1864  ;;  %v740_v59 = vadd.f32 1.0, %v1863_v57 }
 0x235   :  { %v746_v61 = vadd.f32 1.0, %v1865_v46  ;;  %v1867_v63 = vpop.eup %1866 }
 0x236   :  { %1870 = vrcp.f32 %v740_v59  ;;  %v1869_v62 = vpop.eup %1868  ;;  %v753_v44 = vadd.f32 1.0, %v1867_v63 }
 0x237   :  { %1872 = vrcp.f32 %v746_v61 }
 0x238   :  { %1874 = vrcp.f32 %v753_v44 }
 0x240   :  { %v1871_v1 = vpop.eup %1870 }
 0x241   :  { %v1873_v5 = vpop.eup %1872  ;;  %v757_v42 = vmul.f32 %v1871_v1, %v1869_v62 }
 0x242   :  { %v756_v25 = vmul.f32 %v1873_v5, %v2407_v60  ;;  %v1875_v48 = vpop.eup %1874 }
 0x244   :  { %v2449_v45 = vadd.f32 %v757_v42, %v756_v25 }
 0x246   :  { %1876 = vtanh.f32 %v2449_v45 }
 0x250   :  { %v1877_v41 = vpop.eup %1876 }
 0x251   :  { %v760_v43 = vmul.f32 %v1877_v41, %v1875_v48 }
 0x253   :  { %v775_v47 = vpack.c.bf16 %v760_v43, %v760_v43 }
 0x255   :  { %809 = vmatmul.mubr.bf16.vlgmr.msra.gmra.mrb[24].mxu0 %v775_v47  ;;  %850 = vmatmul.mubr.bf16.vlgmr.msra.gmra.mrb[24].mxu1 %v775_v47 }
 0x256   :  { %902 = vmatpush1.bf16.msra.mxu0 %v2169_v8  ;;  %943 = vmatpush1.bf16.msra.mxu1 %v2172_v9 }
 0x257   :  { %903 = vmatprep.subr.bf16.mxu0 %v2176_v10  ;;  %944 = vmatprep.subr.bf16.mxu1 %v2180_v11 }
 0x258   :  { %933 = vmatprep.mubr.bf16.mxu0 %v2768_v2  ;;  %974 = vmatprep.mubr.bf16.mxu1 %v2768_v2 }
 0x25a   :  { %904 = vmatpush1.bf16.msra.mxu0 %v2182_v12  ;;  %945 = vmatpush1.bf16.msra.mxu1 %v2184_v13 }
 0x25b   :  { %905 = vmatprep.subr.bf16.mxu0 %v2193_v15  ;;  %946 = vmatprep.subr.bf16.mxu1 %v2196_v16 }
 0x25e   :  { %906 = vmatpush1.bf16.msra.mxu0 %v2199_v17  ;;  %947 = vmatpush1.bf16.msra.mxu1 %v2201_v18 }
 0x25f   :  { %907 = vmatprep.subr.bf16.mxu0 %v2205_v19  ;;  %948 = vmatprep.subr.bf16.mxu1 %v2208_v20 }
 0x262   :  { %908 = vmatpush1.bf16.msra.mxu0 %v2212_v21  ;;  %949 = vmatpush1.bf16.msra.mxu1 %v2215_v22 }
 0x263   :  { %909 = vmatprep.subr.bf16.mxu0 %v2220_v23  ;;  %950 = vmatprep.subr.bf16.mxu1 %v2224_v24 }
 0x266   :  { %910 = vmatpush1.bf16.msra.mxu0 %v2230_v26  ;;  %951 = vmatpush1.bf16.msra.mxu1 %v2234_v27 }
 0x267   :  { %911 = vmatprep.subr.bf16.mxu0 %v2236_v28  ;;  %952 = vmatprep.subr.bf16.mxu1 %v2239_v29 }
 0x26a   :  { %912 = vmatpush1.bf16.msra.mxu0 %v2244_v30  ;;  %953 = vmatpush1.bf16.msra.mxu1 %v2246_v31 }
 0x26b   :  { %913 = vmatprep.subr.bf16.mxu0 %v2254_v33  ;;  %954 = vmatprep.subr.bf16.mxu1 %v2258_v34 }
 0x26e   :  { %914 = vmatpush1.bf16.msra.mxu0 %v2260_v35  ;;  %955 = vmatpush1.bf16.msra.mxu1 %v2262_v36 }
 0x26f   :  { %915 = vmatprep.subr.bf16.mxu0 %v2264_v37  ;;  %956 = vmatprep.subr.bf16.mxu1 %v2267_v38 }
 0x272   :  { %916 = vmatpush1.bf16.msra.mxu0 %v2272_v39  ;;  %957 = vmatpush1.bf16.msra.mxu1 %v2280_v40 }
 0x273   :  { %1026 = vmatprep.subr.bf16.mxu0 %v2165_v6  ;;  %1067 = vmatprep.subr.bf16.mxu1 %v2167_v7 }
 0x328   :  { %v810_v60 = vpop.f32.mrb[24].mxu0  ;;  %v851_v58 = vpop.f32.mrb[24].mxu1 }
 0x329   :  { %v858_v3 = vadd.f32 %v810_v60, %v2343_v4  ;;  %v860_v50 = vadd.f32 %v851_v58, %v2346_v14  ;;  %v812_v53 = vpop.f32.mrb[25].mxu0  ;;  %v853_v49 = vpop.f32.mrb[25].mxu1 }
 0x32a   :  { %v859_v51 = vadd.f32 %v812_v53, %v2348_v32  ;;  %v861_v52 = vadd.f32 %v853_v49, %v2769_v54  ;;  %v814_v0 = vpop.f32.mrb[26].mxu0  ;;  %v855_v55 = vpop.f32.mrb[26].mxu1  ;;  %v2771_v49 = vld [vmem:[#allocation16_spill] sm:$0xff] }
 0x32b   :  { %v1713_v56 = vmul.f32 -1.442695, %v858_v3  ;;  %v815_v57 = vpop.f32.mrb[27].mxu0  ;;  %v856_v46 = vpop.f32.mrb[27].mxu1  ;;  %v2772_v0 = vld [vmem:[#allocation17_spill] sm:$0xff] }
 0x32c   :  { %v1714_v59 = vmul.f32 -1.442695, %v859_v51  ;;  %v1715_v61 = vmul.f32 -1.442695, %v861_v52 }
 0x32d   :  { %1878 = vpow2.f32 %v1713_v56  ;;  %v2773_v56 = vld [vmem:[#allocation18_spill] sm:$0xff] }
 0x32e   :  { %1880 = vpow2.f32 %v1714_v59 }
 0x32f   :  { %1882 = vpow2.f32 %v1715_v61 }
 0x330   :  { %1884 = vtanh.f32 %v860_v50  ;;  %v2770_v50 = vld [vmem:[#allocation15_spill] sm:$0xff] }
 0x337   :  { %v1879_v63 = vpop.eup %1878 }
 0x338   :  { %v1881_v62 = vpop.eup %1880  ;;  %v865_v4 = vadd.f32 1.0, %v1879_v63 }
 0x339   :  { %v871_v14 = vadd.f32 1.0, %v1881_v62  ;;  %v1883_v32 = vpop.eup %1882 }
 0x33a   :  { %1886 = vrcp.f32 %v865_v4  ;;  %v1885_v1 = vpop.eup %1884  ;;  %v878_v25 = vadd.f32 1.0, %v1883_v32 }
 0x33b   :  { %1888 = vrcp.f32 %v871_v14 }
 0x33c   :  { %1890 = vrcp.f32 %v878_v25 }
 0x344   :  { %v1887_v5 = vpop.eup %1886 }
 0x345   :  { %v1889_v42 = vpop.eup %1888  ;;  %v882_v44 = vmul.f32 %v1887_v5, %v1885_v1 }
 0x346   :  { %v881_v48 = vmul.f32 %v1889_v42, %v2449_v45  ;;  %v1891_v43 = vpop.eup %1890 }
 0x348   :  { %v2491_v41 = vadd.f32 %v882_v44, %v881_v48 }
 0x34a   :  { %1892 = vtanh.f32 %v2491_v41 }
 0x354   :  { %v1893_v47 = vpop.eup %1892 }
 0x355   :  { %v885_v60 = vmul.f32 %v1893_v47, %v1891_v43 }
 0x357   :  { %v900_v58 = vpack.c.bf16 %v885_v60, %v885_v60 }
 0x359   :  { %934 = vmatmul.mubr.bf16.vlgmr.msra.gmra.mrb[28].mxu0 %v900_v58  ;;  %975 = vmatmul.mubr.bf16.vlgmr.msra.gmra.mrb[28].mxu1 %v900_v58 }
 0x35a   :  { %1027 = vmatpush1.bf16.msra.mxu0 %v2169_v8  ;;  %1068 = vmatpush1.bf16.msra.mxu1 %v2172_v9 }
 0x35b   :  { %1028 = vmatprep.subr.bf16.mxu0 %v2176_v10  ;;  %1069 = vmatprep.subr.bf16.mxu1 %v2180_v11 }
 0x35c   :  { %1058 = vmatprep.mubr.bf16.mxu0 %v2768_v2  ;;  %1099 = vmatprep.mubr.bf16.mxu1 %v2768_v2 }
 0x35e   :  { %1029 = vmatpush1.bf16.msra.mxu0 %v2182_v12  ;;  %1070 = vmatpush1.bf16.msra.mxu1 %v2184_v13 }
 0x35f   :  { %1030 = vmatprep.subr.bf16.mxu0 %v2193_v15  ;;  %1071 = vmatprep.subr.bf16.mxu1 %v2196_v16 }
 0x362   :  { %1031 = vmatpush1.bf16.msra.mxu0 %v2199_v17  ;;  %1072 = vmatpush1.bf16.msra.mxu1 %v2201_v18 }
 0x363   :  { %1032 = vmatprep.subr.bf16.mxu0 %v2205_v19  ;;  %1073 = vmatprep.subr.bf16.mxu1 %v2208_v20 }
 0x366   :  { %1033 = vmatpush1.bf16.msra.mxu0 %v2212_v21  ;;  %1074 = vmatpush1.bf16.msra.mxu1 %v2215_v22 }
 0x367   :  { %1034 = vmatprep.subr.bf16.mxu0 %v2220_v23  ;;  %1075 = vmatprep.subr.bf16.mxu1 %v2224_v24 }
 0x36a   :  { %1035 = vmatpush1.bf16.msra.mxu0 %v2230_v26  ;;  %1076 = vmatpush1.bf16.msra.mxu1 %v2234_v27 }
 0x36b   :  { %1036 = vmatprep.subr.bf16.mxu0 %v2236_v28  ;;  %1077 = vmatprep.subr.bf16.mxu1 %v2239_v29 }
 0x36e   :  { %1037 = vmatpush1.bf16.msra.mxu0 %v2244_v30  ;;  %1078 = vmatpush1.bf16.msra.mxu1 %v2246_v31 }
 0x36f   :  { %1038 = vmatprep.subr.bf16.mxu0 %v2254_v33  ;;  %1079 = vmatprep.subr.bf16.mxu1 %v2258_v34 }
 0x372   :  { %1039 = vmatpush1.bf16.msra.mxu0 %v2260_v35  ;;  %1080 = vmatpush1.bf16.msra.mxu1 %v2262_v36 }
 0x373   :  { %1040 = vmatprep.subr.bf16.mxu0 %v2264_v37  ;;  %1081 = vmatprep.subr.bf16.mxu1 %v2267_v38 }
 0x376   :  { %1041 = vmatpush1.bf16.msra.mxu0 %v2272_v39  ;;  %1082 = vmatpush1.bf16.msra.mxu1 %v2280_v40 }
 0x377   :  { %1151 = vmatprep.subr.bf16.mxu0 %v2165_v6  ;;  %1192 = vmatprep.subr.bf16.mxu1 %v2167_v7 }
 0x42c   :  { %v935_v45 = vpop.f32.mrb[28].mxu0  ;;  %v976_v3 = vpop.f32.mrb[28].mxu1 }
 0x42d   :  { %v983_v53 = vadd.f32 %v935_v45, %v2770_v50  ;;  %v985_v51 = vadd.f32 %v976_v3, %v2771_v49  ;;  %v937_v54 = vpop.f32.mrb[29].mxu0  ;;  %v978_v52 = vpop.f32.mrb[29].mxu1 }
 0x42e   :  { %v984_v55 = vadd.f32 %v937_v54, %v2772_v0  ;;  %v986_v57 = vadd.f32 %v978_v52, %v2773_v56  ;;  %v939_v46 = vpop.f32.mrb[30].mxu0  ;;  %v980_v59 = vpop.f32.mrb[30].mxu1 }
 0x42f   :  { %v1716_v61 = vmul.f32 -1.442695, %v983_v53  ;;  %v940_v63 = vpop.f32.mrb[31].mxu0  ;;  %v981_v62 = vpop.f32.mrb[31].mxu1  ;;  %v2585_v46 = vld [vmem:[#allocation5 + $0x8] ss:$16 sps:$4 sm:$0xff]  }
 0x430   :  { %v1717_v6 = vmul.f32 -1.442695, %v984_v55  ;;  %v1718_v7 = vmul.f32 -1.442695, %v986_v57  ;;  %v2582_v57 = vld [vmem:[#allocation5] ss:$16 sps:$4 sm:$0xff]  }
 0x431   :  { %1894 = vpow2.f32 %v1716_v61  ;;  %v2588_v59 = vld [vmem:[#allocation5 + $0x24] ss:$16 sps:$4 sm:$0xff]   ;;  %v2591_v61 = vld [vmem:[#allocation5 + $0x2c] ss:$16 sps:$4 sm:$0xff]   ;;  %v2596_v63 = vld [vmem:[#allocation5 + $0x20] ss:$16 sps:$4 sm:$0xff]  }
 0x432   :  { %1896 = vpow2.f32 %v1717_v6  ;;  %v2599_v62 = vld [vmem:[#allocation5 + $0x28] ss:$16 sps:$4 sm:$0xff]   ;;  %v2602_v6 = vld [vmem:[#allocation5 + $0x44] ss:$16 sps:$4 sm:$0xff]  }
 0x433   :  { %1898 = vpow2.f32 %v1718_v7  ;;  %v2605_v7 = vld [vmem:[#allocation5 + $0x4c] ss:$16 sps:$4 sm:$0xff]  }
 0x434   :  { %1900 = vtanh.f32 %v985_v51 }
 0x43b   :  { %v1895_v4 = vpop.eup %1894 }
 0x43c   :  { %v1897_v14 = vpop.eup %1896  ;;  %v990_v32 = vadd.f32 1.0, %v1895_v4  ;;  %v2608_v4 = vld [vmem:[#allocation5 + $0x40] ss:$16 sps:$4 sm:$0xff]  }
 0x43d   :  { %v996_v1 = vadd.f32 1.0, %v1897_v14  ;;  %v1899_v5 = vpop.eup %1898  ;;  %v2611_v14 = vld [vmem:[#allocation5 + $0x48] ss:$16 sps:$4 sm:$0xff]  }
 0x43e   :  { %1902 = vrcp.f32 %v990_v32  ;;  %v1901_v42 = vpop.eup %1900  ;;  %v1003_v43 = vadd.f32 1.0, %v1899_v5  ;;  %v2614_v32 = vld [vmem:[#allocation5 + $0x64] ss:$16 sps:$4 sm:$0xff]   ;;  %v2620_v5 = vld [vmem:[#allocation5 + $0x60] ss:$16 sps:$4 sm:$0xff]  }
 0x43f   :  { %1904 = vrcp.f32 %v996_v1  ;;  %v2617_v1 = vld [vmem:[#allocation5 + $0x6c] ss:$16 sps:$4 sm:$0xff]  }
 0x440   :  { %1906 = vrcp.f32 %v1003_v43  ;;  %v2635_v43 = vld [vmem:[#allocation5 + $0x88] ss:$16 sps:$4 sm:$0xff]  }
 0x448   :  { %v1903_v44 = vpop.eup %1902 }
 0x449   :  { %v1905_v25 = vpop.eup %1904  ;;  %v1007_v48 = vmul.f32 %v1903_v44, %v1901_v42  ;;  %v2623_v42 = vld [vmem:[#allocation5 + $0x68] ss:$16 sps:$4 sm:$0xff]   ;;  %v2626_v44 = vld [vmem:[#allocation5 + $0x84] ss:$16 sps:$4 sm:$0xff]  }
 0x44a   :  { %v1006_v47 = vmul.f32 %v1905_v25, %v2491_v41  ;;  %v1907_v58 = vpop.eup %1906  ;;  %v2629_v25 = vld [vmem:[#allocation5 + $0x8c] ss:$16 sps:$4 sm:$0xff]  }
 0x44c   :  { %v2533_v60 = vadd.f32 %v1007_v48, %v1006_v47  ;;  %v2632_v48 = vld [vmem:[#allocation5 + $0x80] ss:$16 sps:$4 sm:$0xff]   ;;  %v2638_v47 = vld [vmem:[#allocation5 + $0xa4] ss:$16 sps:$4 sm:$0xff]  }
 0x44e   :  { %1908 = vtanh.f32 %v2533_v60 }
 0x458   :  { %v1909_v45 = vpop.eup %1908 }
 0x459   :  { %v1010_v3 = vmul.f32 %v1909_v45, %v1907_v58  ;;  %v2644_v58 = vld [vmem:[#allocation5 + $0xa0] ss:$16 sps:$4 sm:$0xff]   ;;  %v2647_v45 = vld [vmem:[#allocation5 + $0xa8] ss:$16 sps:$4 sm:$0xff]  }
 0x45b   :  { %v1025_v50 = vpack.c.bf16 %v1010_v3, %v1010_v3  ;;  %v2650_v3 = vld [vmem:[#allocation5 + $0xc4] ss:$16 sps:$4 sm:$0xff]  }
 0x45d   :  { %1059 = vmatmul.mubr.bf16.vlgmr.msra.gmra.mrb[32].mxu0 %v1025_v50  ;;  %1100 = vmatmul.mubr.bf16.vlgmr.msra.gmra.mrb[32].mxu1 %v1025_v50  ;;  %v2653_v50 = vld [vmem:[#allocation5 + $0xcc] ss:$16 sps:$4 sm:$0xff]  }
 0x45e   :  { %1152 = vmatpush1.bf16.msra.mxu0 %v2169_v8  ;;  %1193 = vmatpush1.bf16.msra.mxu1 %v2172_v9  ;;  %v2568_v8 = vld [vmem:[#allocation5 + $0x4] ss:$16 sps:$4 sm:$0xff]   ;;  %v2571_v9 = vld [vmem:[#allocation5 + $0xc] ss:$16 sps:$4 sm:$0xff]  }
 0x45f   :  { %1153 = vmatprep.subr.bf16.mxu0 %v2176_v10  ;;  %1194 = vmatprep.subr.bf16.mxu1 %v2180_v11 }
 0x460   :  { %1183 = vmatprep.mubr.bf16.mxu0 %v2768_v2  ;;  %1224 = vmatprep.mubr.bf16.mxu1 %v2768_v2 }
 0x462   :  { %1154 = vmatpush1.bf16.msra.mxu0 %v2182_v12  ;;  %1195 = vmatpush1.bf16.msra.mxu1 %v2184_v13  ;;  %v2774_v12 = vld [vmem:[#allocation19_spill] sm:$0xff] }
 0x463   :  { %1155 = vmatprep.subr.bf16.mxu0 %v2193_v15  ;;  %1196 = vmatprep.subr.bf16.mxu1 %v2196_v16  ;;  %v2775_v15 = vld [vmem:[#allocation20_spill] sm:$0xff] }
 0x466   :  { %1156 = vmatpush1.bf16.msra.mxu0 %v2199_v17  ;;  %1197 = vmatpush1.bf16.msra.mxu1 %v2201_v18 }
 0x467   :  { %1157 = vmatprep.subr.bf16.mxu0 %v2205_v19  ;;  %1198 = vmatprep.subr.bf16.mxu1 %v2208_v20  ;;  %v2776_v19 = vld [vmem:[#allocation21_spill] sm:$0xff] }
 0x46a   :  { %1158 = vmatpush1.bf16.msra.mxu0 %v2212_v21  ;;  %1199 = vmatpush1.bf16.msra.mxu1 %v2215_v22  ;;  %v2777_v21 = vld [vmem:[#allocation22_spill] sm:$0xff] }
 0x46b   :  { %1159 = vmatprep.subr.bf16.mxu0 %v2220_v23  ;;  %1200 = vmatprep.subr.bf16.mxu1 %v2224_v24 }
 0x46e   :  { %1160 = vmatpush1.bf16.msra.mxu0 %v2230_v26  ;;  %1201 = vmatpush1.bf16.msra.mxu1 %v2234_v27 }
 0x46f   :  { %1161 = vmatprep.subr.bf16.mxu0 %v2236_v28  ;;  %1202 = vmatprep.subr.bf16.mxu1 %v2239_v29 }
 0x472   :  { %1162 = vmatpush1.bf16.msra.mxu0 %v2244_v30  ;;  %1203 = vmatpush1.bf16.msra.mxu1 %v2246_v31 }
 0x473   :  { %1163 = vmatprep.subr.bf16.mxu0 %v2254_v33  ;;  %1204 = vmatprep.subr.bf16.mxu1 %v2258_v34 }
 0x476   :  { %1164 = vmatpush1.bf16.msra.mxu0 %v2260_v35  ;;  %1205 = vmatpush1.bf16.msra.mxu1 %v2262_v36 }
 0x477   :  { %1165 = vmatprep.subr.bf16.mxu0 %v2264_v37  ;;  %1206 = vmatprep.subr.bf16.mxu1 %v2267_v38 }
 0x47a   :  { %1166 = vmatpush1.bf16.msra.mxu0 %v2272_v39  ;;  %1207 = vmatpush1.bf16.msra.mxu1 %v2280_v40 }
 0x47b   :  { %1276 = vmatprep.subr.bf16.mxu0 %v2568_v8  ;;  %1317 = vmatprep.subr.bf16.mxu1 %v2571_v9 }
 0x530   :  { %v1060_v10 = vpop.f32.mrb[32].mxu0  ;;  %v1101_v11 = vpop.f32.mrb[32].mxu1 }
 0x531   :  { %v1108_v13 = vadd.f32 %v1060_v10, %v2774_v12  ;;  %v1110_v16 = vadd.f32 %v1101_v11, %v2775_v15  ;;  %v1062_v17 = vpop.f32.mrb[33].mxu0  ;;  %v1103_v18 = vpop.f32.mrb[33].mxu1  ;;  %v2656_v10 = vld [vmem:[#allocation5 + $0xc0] ss:$16 sps:$4 sm:$0xff]   ;;  %v2659_v11 = vld [vmem:[#allocation5 + $0xc8] ss:$16 sps:$4 sm:$0xff]  }
 0x532   :  { %v1109_v20 = vadd.f32 %v1062_v17, %v2776_v19  ;;  %v1111_v22 = vadd.f32 %v1103_v18, %v2777_v21  ;;  %v1064_v23 = vpop.f32.mrb[34].mxu0  ;;  %v1105_v24 = vpop.f32.mrb[34].mxu1  ;;  %v2662_v12 = vld [vmem:[#allocation5 + $0xe4] ss:$16 sps:$4 sm:$0xff]   ;;  %v2779_v19 = vld [vmem:[#allocation24_spill] sm:$0xff] }
 0x533   :  { %v1719_v26 = vmul.f32 -1.442695, %v1108_v13  ;;  %v1065_v27 = vpop.f32.mrb[35].mxu0  ;;  %v1106_v28 = vpop.f32.mrb[35].mxu1  ;;  %v2665_v13 = vld [vmem:[#allocation5 + $0xec] ss:$16 sps:$4 sm:$0xff]  }
 0x534   :  { %v1720_v29 = vmul.f32 -1.442695, %v1109_v20  ;;  %v1721_v30 = vmul.f32 -1.442695, %v1111_v22  ;;  %v2778_v17 = vld [vmem:[#allocation23_spill] sm:$0xff]  ;;  %v2780_v23 = vld [vmem:[#allocation25_spill] sm:$0xff] }
 0x535   :  { %1910 = vpow2.f32 %v1719_v26  ;;  %v2781_v26 = vld [vmem:[#allocation26_spill] sm:$0xff] }
 0x536   :  { %1912 = vpow2.f32 %v1720_v29 }
 0x537   :  { %1914 = vpow2.f32 %v1721_v30 }
 0x538   :  { %1916 = vtanh.f32 %v1110_v16 }
 0x53f   :  { %v1911_v31 = vpop.eup %1910 }
 0x540   :  { %v1913_v33 = vpop.eup %1912  ;;  %v1115_v34 = vadd.f32 1.0, %v1911_v31 }
 0x541   :  { %v1121_v35 = vadd.f32 1.0, %v1913_v33  ;;  %v1915_v36 = vpop.eup %1914 }
 0x542   :  { %1918 = vrcp.f32 %v1115_v34  ;;  %v1917_v37 = vpop.eup %1916  ;;  %v1128_v49 = vadd.f32 1.0, %v1915_v36 }
 0x543   :  { %1920 = vrcp.f32 %v1121_v35 }
 0x544   :  { %1922 = vrcp.f32 %v1128_v49 }
 0x54c   :  { %v1919_v38 = vpop.eup %1918 }
 0x54d   :  { %v1921_v41 = vpop.eup %1920  ;;  %v1132_v53 = vmul.f32 %v1919_v38, %v1917_v37 }
 0x54e   :  { %v1131_v51 = vmul.f32 %v1921_v41, %v2533_v60  ;;  %v1923_v52 = vpop.eup %1922  ;;  %v2641_v60 = vld [vmem:[#allocation5 + $0xac] ss:$16 sps:$4 sm:$0xff]  }
 0x550   :  { %v2579_v54 = vadd.f32 %v1132_v53, %v1131_v51 }
 0x552   :  { %1924 = vtanh.f32 %v2579_v54 }
 0x55c   :  { %v1925_v0 = vpop.eup %1924 }
 0x55d   :  { %v1135_v55 = vmul.f32 %v1925_v0, %v1923_v52 }
 0x55f   :  { %v1150_v56 = vpack.c.bf16 %v1135_v55, %v1135_v55 }
 0x561   :  { %1184 = vmatmul.mubr.bf16.vlgmr.msra.gmra.mrb[36].mxu0 %v1150_v56  ;;  %1225 = vmatmul.mubr.bf16.vlgmr.msra.gmra.mrb[36].mxu1 %v1150_v56 }
 0x562   :  { %1277 = vmatpush1.bf16.msra.mxu0 %v2582_v57  ;;  %1318 = vmatpush1.bf16.msra.mxu1 %v2585_v46 }
 0x563   :  { %1278 = vmatprep.subr.bf16.mxu0 %v2588_v59  ;;  %1319 = vmatprep.subr.bf16.mxu1 %v2591_v61 }
 0x564   :  { %1308 = vmatprep.mubr.bf16.mxu0 %v2768_v2  ;;  %1349 = vmatprep.mubr.bf16.mxu1 %v2768_v2 }
 0x566   :  { %1279 = vmatpush1.bf16.msra.mxu0 %v2596_v63  ;;  %1320 = vmatpush1.bf16.msra.mxu1 %v2599_v62 }
 0x567   :  { %1280 = vmatprep.subr.bf16.mxu0 %v2602_v6  ;;  %1321 = vmatprep.subr.bf16.mxu1 %v2605_v7 }
 0x56a   :  { %1281 = vmatpush1.bf16.msra.mxu0 %v2608_v4  ;;  %1322 = vmatpush1.bf16.msra.mxu1 %v2611_v14 }
 0x56b   :  { %1282 = vmatprep.subr.bf16.mxu0 %v2614_v32  ;;  %1323 = vmatprep.subr.bf16.mxu1 %v2617_v1 }
 0x56e   :  { %1283 = vmatpush1.bf16.msra.mxu0 %v2620_v5  ;;  %1324 = vmatpush1.bf16.msra.mxu1 %v2623_v42 }
 0x56f   :  { %1284 = vmatprep.subr.bf16.mxu0 %v2626_v44  ;;  %1325 = vmatprep.subr.bf16.mxu1 %v2629_v25 }
 0x572   :  { %1285 = vmatpush1.bf16.msra.mxu0 %v2632_v48  ;;  %1326 = vmatpush1.bf16.msra.mxu1 %v2635_v43 }
 0x573   :  { %1286 = vmatprep.subr.bf16.mxu0 %v2638_v47  ;;  %1327 = vmatprep.subr.bf16.mxu1 %v2641_v60 }
 0x576   :  { %1287 = vmatpush1.bf16.msra.mxu0 %v2644_v58  ;;  %1328 = vmatpush1.bf16.msra.mxu1 %v2647_v45 }
 0x577   :  { %1288 = vmatprep.subr.bf16.mxu0 %v2650_v3  ;;  %1329 = vmatprep.subr.bf16.mxu1 %v2653_v50 }
 0x57a   :  { %1289 = vmatpush1.bf16.msra.mxu0 %v2656_v10  ;;  %1330 = vmatpush1.bf16.msra.mxu1 %v2659_v11 }
 0x57b   :  { %1290 = vmatprep.subr.bf16.mxu0 %v2662_v12  ;;  %1331 = vmatprep.subr.bf16.mxu1 %v2665_v13 }
 0x57e   :  { %1291 = vmatpush1.bf16.msra.mxu0 %v2272_v39  ;;  %1332 = vmatpush1.bf16.msra.mxu1 %v2280_v40 }
 0x57f   :  { %1401 = vmatprep.subr.bf16.mxu0 %v2568_v8  ;;  %1442 = vmatprep.subr.bf16.mxu1 %v2571_v9 }
 0x634   :  { %v1185_v15 = vpop.f32.mrb[36].mxu0  ;;  %v1226_v16 = vpop.f32.mrb[36].mxu1 }
 0x635   :  { %v1233_v18 = vadd.f32 %v1185_v15, %v2778_v17  ;;  %v1235_v20 = vadd.f32 %v1226_v16, %v2779_v19  ;;  %v1187_v21 = vpop.f32.mrb[37].mxu0  ;;  %v1228_v22 = vpop.f32.mrb[37].mxu1 }
 0x636   :  { %v1234_v24 = vadd.f32 %v1187_v21, %v2780_v23  ;;  %v1236_v27 = vadd.f32 %v1228_v22, %v2781_v26  ;;  %v1189_v28 = vpop.f32.mrb[38].mxu0  ;;  %v1230_v39 = vpop.f32.mrb[38].mxu1  ;;  %v1838_v23 = vld [vmem:[#allocation8] sm:$0xff]   ;;  %v1839_v26 = vld [vmem:[#allocation8 + $0x8] sm:$0xff]  }
 0x637   :  { %v1722_v29 = vmul.f32 -1.442695, %v1233_v18  ;;  %v1190_v40 = vpop.f32.mrb[39].mxu0  ;;  %v1231_v30 = vpop.f32.mrb[39].mxu1  ;;  %v1841_v28 = vld [vmem:[#allocation8 + $0x18] sm:$0xff]   ;;  %v1842_v39 = vld [vmem:[#allocation8 + $0x20] sm:$0xff]  }
 0x638   :  { %v1723_v8 = vmul.f32 -1.442695, %v1234_v24  ;;  %v1724_v9 = vmul.f32 -1.442695, %v1236_v27  ;;  %v2086_v24 = vmov 0.0   ;;  %v1840_v27 = vld [vmem:[#allocation8 + $0x10] sm:$0xff]  }
 0x639   :  { %1926 = vpow2.f32 %v1722_v29  ;;  %v1843_v29 = vld [vmem:[#allocation8 + $0x28] sm:$0xff]   ;;  %v1844_v40 = vld [vmem:[#allocation8 + $0x30] sm:$0xff]   ;;  %v1845_v30 = vld [vmem:[#allocation8 + $0x38] sm:$0xff]  }
 0x63a   :  { %1928 = vpow2.f32 %v1723_v8 }
 0x63b   :  { %1930 = vpow2.f32 %v1724_v9 }
 0x63c   :  { %1932 = vtanh.f32 %v1235_v20 }
 0x643   :  { %v1927_v31 = vpop.eup %1926 }
 0x644   :  { %v1929_v33 = vpop.eup %1928  ;;  %v1240_v34 = vadd.f32 1.0, %v1927_v31  ;;  %v2786_v31 = vld [vmem:[#allocation31_spill] sm:$0xff] }
 0x645   :  { %v1246_v35 = vadd.f32 1.0, %v1929_v33  ;;  %v1931_v36 = vpop.eup %1930 }
 0x646   :  { %1934 = vrcp.f32 %v1240_v34  ;;  %v1933_v37 = vpop.eup %1932  ;;  %v1253_v49 = vadd.f32 1.0, %v1931_v36  ;;  %v2787_v34 = vld [vmem:[#allocation32_spill] sm:$0xff] }
 0x647   :  { %1936 = vrcp.f32 %v1246_v35 }
 0x648   :  { %1938 = vrcp.f32 %v1253_v49 }
 0x650   :  { %v1935_v38 = vpop.eup %1934 }
 0x651   :  { %v1937_v41 = vpop.eup %1936  ;;  %v1257_v53 = vmul.f32 %v1935_v38, %v1933_v37  ;;  %v2788_v38 = vld [vmem:[#allocation33_spill] sm:$0xff] }
 0x652   :  { %v1256_v51 = vmul.f32 %v1937_v41, %v2579_v54  ;;  %v1939_v0 = vpop.eup %1938  ;;  %v2005_v54 = vld [vmem:[#allocation5 + $0xe8] ss:$16 sps:$4 sm:$0xff]  }
 0x654   :  { %v2677_v52 = vadd.f32 %v1257_v53, %v1256_v51  ;;  %v2789_v53 = vld [vmem:[#allocation34_spill] sm:$0xff] }
 0x656   :  { %1940 = vtanh.f32 %v2677_v52 }
 0x660   :  { %v1941_v55 = vpop.eup %1940 }
 0x661   :  { %v1260_v56 = vmul.f32 %v1941_v55, %v1939_v0 }
 0x663   :  { %v1275_v15 = vpack.c.bf16 %v1260_v56, %v1260_v56 }
 0x665   :  { %1309 = vmatmul.mubr.bf16.vlgmr.msra.gmra.mrb[40].mxu0 %v1275_v15  ;;  %1350 = vmatmul.mubr.bf16.vlgmr.msra.gmra.mrb[40].mxu1 %v1275_v15 }
 0x666   :  { %1402 = vmatpush1.bf16.msra.mxu0 %v2582_v57  ;;  %1443 = vmatpush1.bf16.msra.mxu1 %v2585_v46 }
 0x667   :  { %1403 = vmatprep.subr.bf16.mxu0 %v2588_v59  ;;  %1444 = vmatprep.subr.bf16.mxu1 %v2591_v61  ;;  %v2782_v59 = vld [vmem:[#allocation27_spill] sm:$0xff] }
 0x668   :  { %1433 = vmatprep.mubr.bf16.mxu0 %v2768_v2  ;;  %1474 = vmatprep.mubr.bf16.mxu1 %v2768_v2  ;;  %v2004_v2 = vld [vmem:[#allocation5 + $0xe0] ss:$16 sps:$4 sm:$0xff]  }
 0x66a   :  { %1404 = vmatpush1.bf16.msra.mxu0 %v2596_v63  ;;  %1445 = vmatpush1.bf16.msra.mxu1 %v2599_v62  ;;  %v2783_v63 = vld [vmem:[#allocation28_spill] sm:$0xff] }
 0x66b   :  { %1405 = vmatprep.subr.bf16.mxu0 %v2602_v6  ;;  %1446 = vmatprep.subr.bf16.mxu1 %v2605_v7 }
 0x66e   :  { %1406 = vmatpush1.bf16.msra.mxu0 %v2608_v4  ;;  %1447 = vmatpush1.bf16.msra.mxu1 %v2611_v14  ;;  %v2784_v4 = vld [vmem:[#allocation29_spill] sm:$0xff] }
 0x66f   :  { %1407 = vmatprep.subr.bf16.mxu0 %v2614_v32  ;;  %1448 = vmatprep.subr.bf16.mxu1 %v2617_v1  ;;  %v2785_v32 = vld [vmem:[#allocation30_spill] sm:$0xff] }
 0x672   :  { %1408 = vmatpush1.bf16.msra.mxu0 %v2620_v5  ;;  %1449 = vmatpush1.bf16.msra.mxu1 %v2623_v42 }
 0x673   :  { %1409 = vmatprep.subr.bf16.mxu0 %v2626_v44  ;;  %1450 = vmatprep.subr.bf16.mxu1 %v2629_v25 }
 0x676   :  { %1410 = vmatpush1.bf16.msra.mxu0 %v2632_v48  ;;  %1451 = vmatpush1.bf16.msra.mxu1 %v2635_v43 }
 0x677   :  { %1411 = vmatprep.subr.bf16.mxu0 %v2638_v47  ;;  %1452 = vmatprep.subr.bf16.mxu1 %v2641_v60 }
 0x67a   :  { %1412 = vmatpush1.bf16.msra.mxu0 %v2644_v58  ;;  %1453 = vmatpush1.bf16.msra.mxu1 %v2647_v45 }
 0x67b   :  { %1413 = vmatprep.subr.bf16.mxu0 %v2650_v3  ;;  %1454 = vmatprep.subr.bf16.mxu1 %v2653_v50 }
 0x67e   :  { %1414 = vmatpush1.bf16.msra.mxu0 %v2656_v10  ;;  %1455 = vmatpush1.bf16.msra.mxu1 %v2659_v11 }
 0x67f   :  { %1415 = vmatprep.subr.bf16.mxu0 %v2662_v12  ;;  %1456 = vmatprep.subr.bf16.mxu1 %v2665_v13 }
 0x682   :  { %1416 = vmatpush1.bf16.msra.mxu0 %v2004_v2  ;;  %1457 = vmatpush1.bf16.msra.mxu1 %v2005_v54 }
 0x683   :  { %1749 = vmatprep.subr.bf16.mxu0 %v2086_v24 }
 0x738   :  { %v1310_v57 = vpop.f32.mrb[40].mxu0  ;;  %v1351_v46 = vpop.f32.mrb[40].mxu1 }
 0x739   :  { %v1358_v61 = vadd.f32 %v1310_v57, %v2782_v59  ;;  %v1360_v62 = vadd.f32 %v1351_v46, %v2783_v63  ;;  %v1312_v6 = vpop.f32.mrb[41].mxu0  ;;  %v1353_v7 = vpop.f32.mrb[41].mxu1 }
 0x73a   :  { %v1359_v14 = vadd.f32 %v1312_v6, %v2784_v4  ;;  %v1361_v1 = vadd.f32 %v1353_v7, %v2785_v32  ;;  %v1314_v5 = vpop.f32.mrb[42].mxu0  ;;  %v1355_v42 = vpop.f32.mrb[42].mxu1 }
 0x73b   :  { %v1725_v44 = vmul.f32 -1.442695, %v1358_v61  ;;  %v1315_v25 = vpop.f32.mrb[43].mxu0  ;;  %v1356_v48 = vpop.f32.mrb[43].mxu1 }
 0x73c   :  { %v1726_v43 = vmul.f32 -1.442695, %v1359_v14  ;;  %v1727_v47 = vmul.f32 -1.442695, %v1361_v1  ;;  %v1731_v25 = vld [vmem:[%s2743_s5] ss:$0 sm:$0xff] }
 0x73d   :  { %1942 = vpow2.f32 %v1725_v44 }
 0x73e   :  { %1944 = vpow2.f32 %v1726_v43 }
 0x73f   :  { %1946 = vpow2.f32 %v1727_v47 }
 0x740   :  { %1948 = vtanh.f32 %v1360_v62 }
 0x747   :  { %v1943_v60 = vpop.eup %1942 }
 0x748   :  { %v1945_v58 = vpop.eup %1944  ;;  %v1365_v45 = vadd.f32 1.0, %v1943_v60 }
 0x749   :  { %v1371_v3 = vadd.f32 1.0, %v1945_v58  ;;  %v1947_v50 = vpop.eup %1946 }
 0x74a   :  { %1950 = vrcp.f32 %v1365_v45  ;;  %v1949_v10 = vpop.eup %1948  ;;  %v1378_v16 = vadd.f32 1.0, %v1947_v50 }
 0x74b   :  { %1952 = vrcp.f32 %v1371_v3 }
 0x74c   :  { %1954 = vrcp.f32 %v1378_v16 }
 0x754   :  { %v1951_v11 = vpop.eup %1950 }
 0x755   :  { %v1953_v12 = vpop.eup %1952  ;;  %v1382_v13 = vmul.f32 %v1951_v11, %v1949_v10 }
 0x756   :  { %v1381_v17 = vmul.f32 %v1953_v12, %v2677_v52  ;;  %v1955_v19 = vpop.eup %1954 }
 0x758   :  { %v2715_v18 = vadd.f32 %v1382_v13, %v1381_v17 }
 0x75a   :  { %1956 = vtanh.f32 %v2715_v18 }
 0x764   :  { %v1957_v20 = vpop.eup %1956 }
 0x765   :  { %v1385_v21 = vmul.f32 %v1957_v20, %v1955_v19 }
 0x767   :  { %v1400_v22 = vpack.c.bf16 %v1385_v21, %v1385_v21 }
 0x769   :  { %1434 = vmatmul.mubr.bf16.vlgmr.msra.gmra.mrb[44].mxu0 %v1400_v22  ;;  %1475 = vmatmul.mubr.bf16.vlgmr.msra.gmra.mrb[44].mxu1 %v1400_v22 }
 0x76a   :  { %1750 = vmatpush3.bf16.msra.mxu0 %v1838_v23  ;;  %1765 = vmatprep.mubr.msk.bf16.mxu0 %vm2087_vm1, %v2086_v24 }
 0x76b   :  { %1751 = vmatprep.subr.bf16.mxu0 %v2086_v24 }
 0x76e   :  { %1752 = vmatpush3.bf16.msra.mxu0 %v1839_v26 }
 0x76f   :  { %1753 = vmatprep.subr.bf16.mxu0 %v2086_v24 }
 0x772   :  { %1754 = vmatpush3.bf16.msra.mxu0 %v1840_v27 }
 0x773   :  { %1755 = vmatprep.subr.bf16.mxu0 %v2086_v24 }
 0x776   :  { %1756 = vmatpush3.bf16.msra.mxu0 %v1841_v28 }
 0x777   :  { %1757 = vmatprep.subr.bf16.mxu0 %v2086_v24 }
 0x77a   :  { %1758 = vmatpush3.bf16.msra.mxu0 %v1842_v39 }
 0x77b   :  { %1759 = vmatprep.subr.bf16.mxu0 %v2086_v24 }
 0x77e   :  { %1760 = vmatpush3.bf16.msra.mxu0 %v1843_v29 }
 0x77f   :  { %1761 = vmatprep.subr.bf16.mxu0 %v2086_v24 }
 0x782   :  { %1762 = vmatpush3.bf16.msra.mxu0 %v1844_v40 }
 0x783   :  { %1763 = vmatprep.subr.bf16.mxu0 %v2086_v24 }
 0x786   :  { %1764 = vmatpush3.bf16.msra.mxu0 %v1845_v30 }
 0x83c   :  { %v1435_v8 = vpop.f32.mrb[44].mxu0  ;;  %v1476_v9 = vpop.f32.mrb[44].mxu1 }
 0x83d   :  { %v1483_v33 = vadd.f32 %v1435_v8, %v2786_v31  ;;  %v1485_v35 = vadd.f32 %v1476_v9, %v2787_v34  ;;  %v1437_v36 = vpop.f32.mrb[45].mxu0  ;;  %v1478_v37 = vpop.f32.mrb[45].mxu1 }
 0x83e   :  { %v1484_v41 = vadd.f32 %v1437_v36, %v2788_v38  ;;  %v1486_v49 = vadd.f32 %v1478_v37, %v2789_v53  ;;  %v1439_v51 = vpop.f32.mrb[46].mxu0  ;;  %v1480_v52 = vpop.f32.mrb[46].mxu1 }
 0x83f   :  { %v1728_v0 = vmul.f32 -1.442695, %v1483_v33  ;;  %v1440_v55 = vpop.f32.mrb[47].mxu0  ;;  %v1481_v56 = vpop.f32.mrb[47].mxu1 }
 0x840   :  { %v1729_v15 = vmul.f32 -1.442695, %v1484_v41  ;;  %v1730_v2 = vmul.f32 -1.442695, %v1486_v49 }
 0x841   :  { %1958 = vpow2.f32 %v1728_v0 }
 0x842   :  { %1960 = vpow2.f32 %v1729_v15 }
 0x843   :  { %1962 = vpow2.f32 %v1730_v2 }
 0x844   :  { %1964 = vtanh.f32 %v1485_v35 }
 0x84b   :  { %v1959_v54 = vpop.eup %1958 }
 0x84c   :  { %v1961_v57 = vpop.eup %1960  ;;  %v1490_v46 = vadd.f32 1.0, %v1959_v54 }
 0x84d   :  { %v1496_v59 = vadd.f32 1.0, %v1961_v57  ;;  %v1963_v61 = vpop.eup %1962 }
 0x84e   :  { %1966 = vrcp.f32 %v1490_v46  ;;  %v1965_v63 = vpop.eup %1964  ;;  %v1503_v4 = vadd.f32 1.0, %v1963_v61 }
 0x84f   :  { %1968 = vrcp.f32 %v1496_v59 }
 0x850   :  { %1970 = vrcp.f32 %v1503_v4 }
 0x858   :  { %v1967_v62 = vpop.eup %1966 }
 0x859   :  { %v1969_v6 = vpop.eup %1968  ;;  %v1507_v7 = vmul.f32 %v1967_v62, %v1965_v63 }
 0x85a   :  { %v1506_v14 = vmul.f32 %v1969_v6, %v2715_v18  ;;  %v1971_v1 = vpop.eup %1970 }
 0x85c   :  { %v1508_v32 = vadd.f32 %v1507_v7, %v1506_v14 }
 0x85e   :  { %1972 = vtanh.f32 %v1508_v32 }
 0x868   :  { %v1973_v5 = vpop.eup %1972 }
 0x869   :  { %v1510_v42 = vmul.f32 %v1973_v5, %v1971_v1 }
 0x86b   :  { %v1523_v44 = vpack.c.bf16 %v1510_v42, %v1510_v42 }
 0x86d   :  { %1766 = vmatmul.mubr.bf16.vlgmr.msra.gmra.mrb[48].mxu0 %v1523_v44 }
 0x940   :  { %v1629_v48 = vpop.f32.mrb[48].mxu0 }
 0x941   :  { %v1630_v43 = vadd.f32 %v1731_v25, %v1629_v48  ;;  %v1767_v47 = vpop.f32.mrb[49].mxu0 }
 0x942   :  { %v1632_v60 = vpop.f32.mrb[50].mxu0 }
 0x943   :  { %1635 = vst [vmem:[#allocation10] sm:$0xff] %v1630_v43  ;;  %v1768_v58 = vpop.f32.mrb[51].mxu0 }
 0x944   :  { %2061 = shalt.err (!%p2058_p6)
}
 0x945   :  { %s2062_s5 = scalar_lea.hbm %s2744_s6, 128 }
 0x946   :  { %p2063_p7 = scmp.ne.s32.totalorder %s2744_s6, %s2062_s5  ;;  %p2066_p8 = scmp.lt.u32.totalorder %s2062_s5, %s2744_s6 }
 0x948   :  { %p2068_p9 = pnand %p2066_p8, %p2063_p7 }
 0x94a   :  { %2071 = shalt.err (!%p2068_p9)
}
 0x94b   :  { %1645 = dma.vmem_to_hbm [thread:$0]  %s1643_s17, 128, %s2744_s6, [#allocation7]  }
 0x94c   :  { %2076 = dma.done.wait [#allocation7], 128  }
 0x94d   :  { %2077 = vsyncadd [#allocation7], 4294967168 }
 0x94e   :  { %1649 = vsyncpa [#allocation6], 1 }
 0x94f   :  { %1650 = vsyncpa [#allocation9], 1 }
 0x950   :  { %1651 = vsyncpa [#allocation7], 1 }

</bundles_post_ra>
